<compile_context>
chip_gen: v6e
topology: v6e:2x2x1
jax: 0.10.0
libtpu: 0.0.40
codegen_flags: <defaults>
</compile_context>

<pallas_src>
import functools

import jax
import jax.numpy as jnp
from jax.experimental import pallas as pl
from jax.experimental.pallas import tpu as pltpu


# ----------------------------------------------------------------------------
# Small helpers
# ----------------------------------------------------------------------------
def _round_up(n, m):
    return ((n + m - 1) // m) * m


def _pad2(a, rows, cols):
    return jnp.pad(a, ((0, rows - a.shape[0]), (0, cols - a.shape[1])))


# ----------------------------------------------------------------------------
# Fused kernel: all RNN layers + FC head.  Grid = (batch_blocks, time_chunks).
# Per chunk and per layer: one big projection matmul, then tc unrolled serial
# steps with h carried in registers.  The per-layer hidden state is persisted
# across chunks in h_s; the per-chunk layer output lives in seq_s (VMEM only).
# ----------------------------------------------------------------------------
def fused_rnn_kernel(x_ref, *rest, n_layers, tc, last_step, act):
    w_refs = rest[:3 * n_layers]             # (w_ih, w_hh, b) per layer
    fcw_ref = rest[3 * n_layers]
    fcb_ref = rest[3 * n_layers + 1]
    y_ref = rest[3 * n_layers + 2]
    seq_s = rest[3 * n_layers + 3]           # (tc, Bt, Hp) f32 scratch
    h_s = rest[3 * n_layers + 4]             # (L, Bt, Hp) f32 scratch

    c = pl.program_id(1)                     # time-chunk index

    @pl.when(c == 0)
    def _():
        h_s[...] = jnp.zeros_like(h_s)

    is_last_chunk = c == pl.num_programs(1) - 1

    for l in range(n_layers):
        w_ih = w_refs[3 * l][...]
        w_hh = w_refs[3 * l + 1][...]
        bias = w_refs[3 * l + 2][...]        # (1, Hp)

        # Non-recurrent projection for the whole chunk in one MXU matmul.
        xin = x_ref[...] if l == 0 else seq_s[...]
        t_, b_, d_ = xin.shape
        xproj = jnp.dot(xin.reshape(t_ * b_, d_), w_ih,
                        preferred_element_type=jnp.float32) + bias
        seq_s[...] = xproj.reshape(seq_s.shape)

        # Serial recurrence over the chunk; h stays in registers.
        h = h_s[l]
        for i in range(tc):
            h = jnp.tanh(
                seq_s[i]
                + jnp.dot(h, w_hh, preferred_element_type=jnp.float32))
            if l < n_layers - 1:
                seq_s[i] = h                 # becomes next layer's input
            elif i == last_step:
                @pl.when(is_last_chunk)
                def _(h=h):
                    y = (jnp.dot(h, fcw_ref[...],
                                 preferred_element_type=jnp.float32)
                         + fcb_ref[...])
                    if act == "relu":
                        y = jnp.maximum(y, 0.0)
                    elif act == "tanh":
                        y = jnp.tanh(y)
                    elif act == "sigmoid":
                        y = jax.nn.sigmoid(y)
                    y_ref[...] = y.astype(y_ref.dtype)
        h_s[l] = h


# ----------------------------------------------------------------------------
# Full forward, matching RNNNet.forward semantics.
# ----------------------------------------------------------------------------
def rnn_net_forward(x, params, activation=None):
    # x: (B, T, input_size) batch-first, like the PyTorch module.
    B, T, D = x.shape
    H = params["rnn_layers"][0]["w_hh"].shape[0]
    O = params["fc_w"].shape[1]
    L = len(params["rnn_layers"])

    Bp = _round_up(B, 8)      # sublane multiple
    Dp = _round_up(D, 128)    # lane multiples
    Hp = _round_up(H, 128)
    Op = _round_up(O, 128)

    # Batch blocks: split in two when possible so a megacore / v7x can shard the
    # (independent-across-batch) recurrence across TensorCores.
    Bt = Bp // 2 if (Bp >= 16 and Bp % 16 == 0) else Bp
    n_bb = Bp // Bt

    # Time chunk: amortize per-grid-step overhead (~0.35us); cap the unroll when
    # the per-step vreg footprint (Bt/8 * Hp/128 vregs) gets large.
    vregs_per_h = (Bt // 8) * (Hp // 128)
    max_tc = 32 if vregs_per_h <= 4 else (16 if vregs_per_h <= 16 else 8)
    tc = min(T, max_tc)
    n_chunks = (T + tc - 1) // tc
    T_pad = n_chunks * tc
    last_step = (T - 1) % tc          # static in-chunk index of t == T-1

    # Time-major, (8,128)-aligned input; padded tail timesteps are computed but
    # never read (the FC head fires exactly at t == T-1).
    x_tm = jnp.transpose(x, (1, 0, 2))
    x_tm = jnp.pad(x_tm, ((0, T_pad - T), (0, Bp - B), (0, Dp - D)))

    operands = [x_tm]
    in_specs = [pl.BlockSpec((tc, Bt, Dp), lambda b, c: (c, b, 0))]
    for li, layer in enumerate(params["rnn_layers"]):
        in_p = Dp if li == 0 else Hp
        operands += [_pad2(layer["w_ih"], in_p, Hp),
                     _pad2(layer["w_hh"], Hp, Hp),
                     _pad2(layer["b"], 1, Hp)]
        in_specs += [pl.BlockSpec((in_p, Hp), lambda b, c: (0, 0)),
                     pl.BlockSpec((Hp, Hp), lambda b, c: (0, 0)),
                     pl.BlockSpec((1, Hp), lambda b, c: (0, 0))]
    operands += [_pad2(params["fc_w"], Hp, Op), _pad2(params["fc_b"], 1, Op)]
    in_specs += [pl.BlockSpec((Hp, Op), lambda b, c: (0, 0)),
                 pl.BlockSpec((1, Op), lambda b, c: (0, 0))]

    # Rough VMEM budget (double-buffered blocks + scratch); raise the scoped
    # limit only when the default would be exceeded.
    f32 = 4
    est = (2 * tc * Bt * Dp * f32
           + 2 * sum(int(w.size) for w in operands[1:]) * f32
           + 2 * Bt * Op * f32
           + tc * Bt * Hp * f32 + L * Bt * Hp * f32)
    cp = dict(dimension_semantics=("parallel", "arbitrary"))
    if est > 30 * 2**20:
        cp["vmem_limit_bytes"] = int(min(est * 1.25, 100 * 2**20))

    y_p = pl.pallas_call(
        functools.partial(fused_rnn_kernel, n_layers=L, tc=tc,
                          last_step=last_step, act=activation),
        out_shape=jax.ShapeDtypeStruct((Bp, Op), x.dtype),
        grid_spec=pltpu.PrefetchScalarGridSpec(
            num_scalar_prefetch=0,
            grid=(n_bb, n_chunks),
            in_specs=in_specs,
            out_specs=pl.BlockSpec((Bt, Op), lambda b, c: (b, 0)),
            scratch_shapes=[pltpu.VMEM((tc, Bt, Hp), jnp.float32),
                            pltpu.VMEM((L, Bt, Hp), jnp.float32)],
        ),
        compiler_params=pltpu.CompilerParams(**cp),
    )(*operands)

    return y_p[:B, :O]


# ----------------------------------------------------------------------------
# Pure-JAX reference (correctness check).
# ----------------------------------------------------------------------------
def rnn_net_reference(x, params, activation=None):
    h_seq = jnp.transpose(x, (1, 0, 2))
    B = x.shape[0]
    for layer in params["rnn_layers"]:
        H = layer["w_hh"].shape[0]

        def step(h, x_t, layer=layer):
            h_new = jnp.tanh(x_t @ layer["w_ih"] + h @ layer["w_hh"] + layer["b"][0])
            return h_new, h_new

        _, h_seq = jax.lax.scan(step, jnp.zeros((B, H), x.dtype), h_seq)
    y = h_seq[-1] @ params["fc_w"] + params["fc_b"][0]
    if activation == "relu":
        y = jnp.maximum(y, 0.0)
    elif activation == "tanh":
        y = jnp.tanh(y)
    elif activation == "sigmoid":
        y = jax.nn.sigmoid(y)
    return y


def init_params(key, input_size, hidden_size, num_layers, output_size):
    """Deterministic init mimicking PyTorch's U(-1/sqrt(H), 1/sqrt(H)).

    Note: weights are stored as (in, out); importing a real PyTorch state_dict
    (weight_ih_l{k} is (H, in)) requires a transpose.
    """
    params = {"rnn_layers": []}
    bound = 1.0 / jnp.sqrt(hidden_size)
    for l in range(num_layers):
        d_in = input_size if l == 0 else hidden_size
        key, k1, k2, k3, k4 = jax.random.split(key, 5)
        w_ih = jax.random.uniform(k1, (d_in, hidden_size), jnp.float32, -bound, bound)
        w_hh = jax.random.uniform(k2, (hidden_size, hidden_size), jnp.float32, -bound, bound)
        b_ih = jax.random.uniform(k3, (hidden_size,), jnp.float32, -bound, bound)
        b_hh = jax.random.uniform(k4, (hidden_size,), jnp.float32, -bound, bound)
        params["rnn_layers"].append(
            {"w_ih": w_ih, "w_hh": w_hh, "b": (b_ih + b_hh)[None, :]})
    key, k5, k6 = jax.random.split(key, 3)
    fb = 1.0 / jnp.sqrt(hidden_size)
    params["fc_w"] = jax.random.uniform(k5, (hidden_size, output_size), jnp.float32, -fb, fb)
    params["fc_b"] = jax.random.uniform(k6, (1, output_size), jnp.float32, -fb, fb)
    return params


if __name__ == "__main__":
    # Small, module-consistent shapes.
    batch, seq_len = 2, 8
    input_size, hidden_size, num_layers, output_size = 16, 32, 2, 4
    activation = "relu"

    key = jax.random.PRNGKey(0)
    key, kx = jax.random.split(key)
    x = jax.random.normal(kx, (batch, seq_len, input_size), jnp.float32)

    params = init_params(key, input_size, hidden_size, num_layers, output_size)

    out = rnn_net_forward(x, params, activation)
    out = jax.block_until_ready(out)

    ref = rnn_net_reference(x, params, activation)
    assert out.shape == (batch, output_size)
    assert jnp.allclose(out, ref, atol=1e-4, rtol=1e-4), (
        "mismatch vs JAX reference: max abs diff = "
        f"{float(jnp.max(jnp.abs(out - ref)))}")

    print("KERNEL_OK")
</pallas_src>

<mosaic_0001>
module attributes {stable_mosaic.version = 11 : i64} {
  func.func @fused_rnn_kernel(%arg0: i32, %arg1: i32, %arg2: memref<8x8x128xf32, #tpu.memory_space<vmem>>, %arg3: memref<128x128xf32, #tpu.memory_space<vmem>>, %arg4: memref<128x128xf32, #tpu.memory_space<vmem>>, %arg5: memref<1x128xf32, #tpu.memory_space<vmem>>, %arg6: memref<128x128xf32, #tpu.memory_space<vmem>>, %arg7: memref<128x128xf32, #tpu.memory_space<vmem>>, %arg8: memref<1x128xf32, #tpu.memory_space<vmem>>, %arg9: memref<128x128xf32, #tpu.memory_space<vmem>>, %arg10: memref<1x128xf32, #tpu.memory_space<vmem>>, %arg11: memref<8x128xf32, #tpu.memory_space<vmem>>, %arg12: memref<8x8x128xf32, #tpu.memory_space<vmem>>, %arg13: memref<2x8x128xf32, #tpu.memory_space<vmem>>) attributes {dimension_semantics = [#tpu.dimension_semantics<parallel>, #tpu.dimension_semantics<arbitrary>], iteration_bounds = array<i64: 1, 1>, scalar_prefetch = 0 : i64, scratch_operands = 2 : i64, tpu.core_type = #tpu.core_type<tc>, window_params = [{transform_indices = @transform_0, window_bounds = array<i64: 8, 8, 128>}, {pipeline_mode = #tpu.pipeline_mode<synchronous>, transform_indices = @transform_1, window_bounds = array<i64: 128, 128>}, {pipeline_mode = #tpu.pipeline_mode<synchronous>, transform_indices = @transform_2, window_bounds = array<i64: 128, 128>}, {pipeline_mode = #tpu.pipeline_mode<synchronous>, transform_indices = @transform_3, window_bounds = array<i64: 1, 128>}, {pipeline_mode = #tpu.pipeline_mode<synchronous>, transform_indices = @transform_4, window_bounds = array<i64: 128, 128>}, {pipeline_mode = #tpu.pipeline_mode<synchronous>, transform_indices = @transform_5, window_bounds = array<i64: 128, 128>}, {pipeline_mode = #tpu.pipeline_mode<synchronous>, transform_indices = @transform_6, window_bounds = array<i64: 1, 128>}, {pipeline_mode = #tpu.pipeline_mode<synchronous>, transform_indices = @transform_7, window_bounds = array<i64: 128, 128>}, {pipeline_mode = #tpu.pipeline_mode<synchronous>, transform_indices = @transform_8, window_bounds = array<i64: 1, 128>}, {transform_indices = @transform_9, window_bounds = array<i64: 8, 128>}]} {
    %c0_i32 = arith.constant 0 : i32
    %0 = arith.cmpi eq, %arg1, %c0_i32 : i32
    %1 = arith.extui %0 : i1 to i32
    %c0_i32_0 = arith.constant 0 : i32
    %2 = arith.cmpi ne, %1, %c0_i32_0 : i32
    scf.if %2 {
      %cst_120 = arith.constant 0.000000e+00 : f32
      %140 = vector.broadcast %cst_120 : f32 to vector<2x8x128xf32>
      %c0_121 = arith.constant 0 : index
      %c0_122 = arith.constant 0 : index
      %c0_123 = arith.constant 0 : index
      %141 = vector.load %arg13[%c0_121, %c0_122, %c0_123] : memref<2x8x128xf32, #tpu.memory_space<vmem>>, vector<2x8x128xf32>
      tpu.vector_store %arg13[%c0_121, %c0_122, %c0_123], %140 {strides = array<i32>} : memref<2x8x128xf32, #tpu.memory_space<vmem>>, vector<2x8x128xf32>,
    } else {
    }
    %c0_i32_1 = arith.constant 0 : i32
    %3 = arith.cmpi eq, %arg1, %c0_i32_1 : i32
    %c0 = arith.constant 0 : index
    %c0_2 = arith.constant 0 : index
    %4 = vector.load %arg3[%c0, %c0_2] : memref<128x128xf32, #tpu.memory_space<vmem>>, vector<128x128xf32>
    %c0_3 = arith.constant 0 : index
    %c0_4 = arith.constant 0 : index
    %5 = vector.load %arg4[%c0_3, %c0_4] : memref<128x128xf32, #tpu.memory_space<vmem>>, vector<128x128xf32>
    %c0_5 = arith.constant 0 : index
    %c0_6 = arith.constant 0 : index
    %6 = vector.load %arg5[%c0_5, %c0_6] : memref<1x128xf32, #tpu.memory_space<vmem>>, vector<1x128xf32>
    %c0_7 = arith.constant 0 : index
    %c0_8 = arith.constant 0 : index
    %c0_9 = arith.constant 0 : index
    %7 = vector.load %arg2[%c0_7, %c0_8, %c0_9] : memref<8x8x128xf32, #tpu.memory_space<vmem>>, vector<8x8x128xf32>
    %8 = vector.shape_cast %7 : vector<8x8x128xf32> to vector<64x128xf32>
    %cst = arith.constant dense<0.000000e+00> : vector<64x128xf32>
    %9 = tpu.matmul %8, %4, %cst {dimension_numbers = #tpu.dot_dimension_numbers<[1], [0], [0], [1], [0, 0, 1, 1], [], []>} : vector<64x128xf32>, vector<128x128xf32>, vector<64x128xf32> -> vector<64x128xf32>
    %10 = vector.broadcast %6 : vector<1x128xf32> to vector<64x128xf32>
    %11 = arith.addf %9, %10 : vector<64x128xf32>
    %12 = vector.shape_cast %11 : vector<64x128xf32> to vector<8x8x128xf32>
    %c0_10 = arith.constant 0 : index
    %c0_11 = arith.constant 0 : index
    %c0_12 = arith.constant 0 : index
    %13 = vector.load %arg12[%c0_10, %c0_11, %c0_12] : memref<8x8x128xf32, #tpu.memory_space<vmem>>, vector<8x8x128xf32>
    tpu.vector_store %arg12[%c0_10, %c0_11, %c0_12], %12 {strides = array<i32>} : memref<8x8x128xf32, #tpu.memory_space<vmem>>, vector<8x8x128xf32>,
    %c0_13 = arith.constant 0 : index
    %c0_14 = arith.constant 0 : index
    %c0_15 = arith.constant 0 : index
    %14 = vector.load %arg13[%c0_13, %c0_14, %c0_15] : memref<2x8x128xf32, #tpu.memory_space<vmem>>, vector<1x8x128xf32>
    %15 = vector.shape_cast %14 : vector<1x8x128xf32> to vector<8x128xf32>
    %c0_16 = arith.constant 0 : index
    %c0_17 = arith.constant 0 : index
    %c0_18 = arith.constant 0 : index
    %16 = vector.load %arg12[%c0_16, %c0_17, %c0_18] : memref<8x8x128xf32, #tpu.memory_space<vmem>>, vector<1x8x128xf32>
    %17 = vector.shape_cast %16 : vector<1x8x128xf32> to vector<8x128xf32>
    %cst_19 = arith.constant dense<0.000000e+00> : vector<8x128xf32>
    %18 = tpu.matmul %15, %5, %cst_19 {dimension_numbers = #tpu.dot_dimension_numbers<[1], [0], [0], [1], [0, 0, 1, 1], [], []>} : vector<8x128xf32>, vector<128x128xf32>, vector<8x128xf32> -> vector<8x128xf32>
    %19 = arith.addf %17, %18 : vector<8x128xf32>
    %20 = math.tanh %19 : vector<8x128xf32>
    %c0_20 = arith.constant 0 : index
    %c0_21 = arith.constant 0 : index
    %c0_22 = arith.constant 0 : index
    %21 = vector.load %arg12[%c0_20, %c0_21, %c0_22] : memref<8x8x128xf32, #tpu.memory_space<vmem>>, vector<1x8x128xf32>
    %22 = vector.shape_cast %21 : vector<1x8x128xf32> to vector<8x128xf32>
    %23 = vector.shape_cast %20 : vector<8x128xf32> to vector<1x8x128xf32>
    tpu.vector_store %arg12[%c0_20, %c0_21, %c0_22], %23 {strides = array<i32>} : memref<8x8x128xf32, #tpu.memory_space<vmem>>, vector<1x8x128xf32>,
    %c1 = arith.constant 1 : index
    %c0_23 = arith.constant 0 : index
    %c0_24 = arith.constant 0 : index
    %24 = vector.load %arg12[%c1, %c0_23, %c0_24] : memref<8x8x128xf32, #tpu.memory_space<vmem>>, vector<1x8x128xf32>
    %25 = vector.shape_cast %24 : vector<1x8x128xf32> to vector<8x128xf32>
    %cst_25 = arith.constant dense<0.000000e+00> : vector<8x128xf32>
    %26 = tpu.matmul %20, %5, %cst_25 {dimension_numbers = #tpu.dot_dimension_numbers<[1], [0], [0], [1], [0, 0, 1, 1], [], []>} : vector<8x128xf32>, vector<128x128xf32>, vector<8x128xf32> -> vector<8x128xf32>
    %27 = arith.addf %25, %26 : vector<8x128xf32>
    %28 = math.tanh %27 : vector<8x128xf32>
    %c1_26 = arith.constant 1 : index
    %c0_27 = arith.constant 0 : index
    %c0_28 = arith.constant 0 : index
    %29 = vector.load %arg12[%c1_26, %c0_27, %c0_28] : memref<8x8x128xf32, #tpu.memory_space<vmem>>, vector<1x8x128xf32>
    %30 = vector.shape_cast %29 : vector<1x8x128xf32> to vector<8x128xf32>
    %31 = vector.shape_cast %28 : vector<8x128xf32> to vector<1x8x128xf32>
    tpu.vector_store %arg12[%c1_26, %c0_27, %c0_28], %31 {strides = array<i32>} : memref<8x8x128xf32, #tpu.memory_space<vmem>>, vector<1x8x128xf32>,
    %c2 = arith.constant 2 : index
    %c0_29 = arith.constant 0 : index
    %c0_30 = arith.constant 0 : index
    %32 = vector.load %arg12[%c2, %c0_29, %c0_30] : memref<8x8x128xf32, #tpu.memory_space<vmem>>, vector<1x8x128xf32>
    %33 = vector.shape_cast %32 : vector<1x8x128xf32> to vector<8x128xf32>
    %cst_31 = arith.constant dense<0.000000e+00> : vector<8x128xf32>
    %34 = tpu.matmul %28, %5, %cst_31 {dimension_numbers = #tpu.dot_dimension_numbers<[1], [0], [0], [1], [0, 0, 1, 1], [], []>} : vector<8x128xf32>, vector<128x128xf32>, vector<8x128xf32> -> vector<8x128xf32>
    %35 = arith.addf %33, %34 : vector<8x128xf32>
    %36 = math.tanh %35 : vector<8x128xf32>
    %c2_32 = arith.constant 2 : index
    %c0_33 = arith.constant 0 : index
    %c0_34 = arith.constant 0 : index
    %37 = vector.load %arg12[%c2_32, %c0_33, %c0_34] : memref<8x8x128xf32, #tpu.memory_space<vmem>>, vector<1x8x128xf32>
    %38 = vector.shape_cast %37 : vector<1x8x128xf32> to vector<8x128xf32>
    %39 = vector.shape_cast %36 : vector<8x128xf32> to vector<1x8x128xf32>
    tpu.vector_store %arg12[%c2_32, %c0_33, %c0_34], %39 {strides = array<i32>} : memref<8x8x128xf32, #tpu.memory_space<vmem>>, vector<1x8x128xf32>,
    %c3 = arith.constant 3 : index
    %c0_35 = arith.constant 0 : index
    %c0_36 = arith.constant 0 : index
    %40 = vector.load %arg12[%c3, %c0_35, %c0_36] : memref<8x8x128xf32, #tpu.memory_space<vmem>>, vector<1x8x128xf32>
    %41 = vector.shape_cast %40 : vector<1x8x128xf32> to vector<8x128xf32>
    %cst_37 = arith.constant dense<0.000000e+00> : vector<8x128xf32>
    %42 = tpu.matmul %36, %5, %cst_37 {dimension_numbers = #tpu.dot_dimension_numbers<[1], [0], [0], [1], [0, 0, 1, 1], [], []>} : vector<8x128xf32>, vector<128x128xf32>, vector<8x128xf32> -> vector<8x128xf32>
    %43 = arith.addf %41, %42 : vector<8x128xf32>
    %44 = math.tanh %43 : vector<8x128xf32>
    %c3_38 = arith.constant 3 : index
    %c0_39 = arith.constant 0 : index
    %c0_40 = arith.constant 0 : index
    %45 = vector.load %arg12[%c3_38, %c0_39, %c0_40] : memref<8x8x128xf32, #tpu.memory_space<vmem>>, vector<1x8x128xf32>
    %46 = vector.shape_cast %45 : vector<1x8x128xf32> to vector<8x128xf32>
    %47 = vector.shape_cast %44 : vector<8x128xf32> to vector<1x8x128xf32>
    tpu.vector_store %arg12[%c3_38, %c0_39, %c0_40], %47 {strides = array<i32>} : memref<8x8x128xf32, #tpu.memory_space<vmem>>, vector<1x8x128xf32>,
    %c4 = arith.constant 4 : index
    %c0_41 = arith.constant 0 : index
    %c0_42 = arith.constant 0 : index
    %48 = vector.load %arg12[%c4, %c0_41, %c0_42] : memref<8x8x128xf32, #tpu.memory_space<vmem>>, vector<1x8x128xf32>
    %49 = vector.shape_cast %48 : vector<1x8x128xf32> to vector<8x128xf32>
    %cst_43 = arith.constant dense<0.000000e+00> : vector<8x128xf32>
    %50 = tpu.matmul %44, %5, %cst_43 {dimension_numbers = #tpu.dot_dimension_numbers<[1], [0], [0], [1], [0, 0, 1, 1], [], []>} : vector<8x128xf32>, vector<128x128xf32>, vector<8x128xf32> -> vector<8x128xf32>
    %51 = arith.addf %49, %50 : vector<8x128xf32>
    %52 = math.tanh %51 : vector<8x128xf32>
    %c4_44 = arith.constant 4 : index
    %c0_45 = arith.constant 0 : index
    %c0_46 = arith.constant 0 : index
    %53 = vector.load %arg12[%c4_44, %c0_45, %c0_46] : memref<8x8x128xf32, #tpu.memory_space<vmem>>, vector<1x8x128xf32>
    %54 = vector.shape_cast %53 : vector<1x8x128xf32> to vector<8x128xf32>
    %55 = vector.shape_cast %52 : vector<8x128xf32> to vector<1x8x128xf32>
    tpu.vector_store %arg12[%c4_44, %c0_45, %c0_46], %55 {strides = array<i32>} : memref<8x8x128xf32, #tpu.memory_space<vmem>>, vector<1x8x128xf32>,
    %c5 = arith.constant 5 : index
    %c0_47 = arith.constant 0 : index
    %c0_48 = arith.constant 0 : index
    %56 = vector.load %arg12[%c5, %c0_47, %c0_48] : memref<8x8x128xf32, #tpu.memory_space<vmem>>, vector<1x8x128xf32>
    %57 = vector.shape_cast %56 : vector<1x8x128xf32> to vector<8x128xf32>
    %cst_49 = arith.constant dense<0.000000e+00> : vector<8x128xf32>
    %58 = tpu.matmul %52, %5, %cst_49 {dimension_numbers = #tpu.dot_dimension_numbers<[1], [0], [0], [1], [0, 0, 1, 1], [], []>} : vector<8x128xf32>, vector<128x128xf32>, vector<8x128xf32> -> vector<8x128xf32>
    %59 = arith.addf %57, %58 : vector<8x128xf32>
    %60 = math.tanh %59 : vector<8x128xf32>
    %c5_50 = arith.constant 5 : index
    %c0_51 = arith.constant 0 : index
    %c0_52 = arith.constant 0 : index
    %61 = vector.load %arg12[%c5_50, %c0_51, %c0_52] : memref<8x8x128xf32, #tpu.memory_space<vmem>>, vector<1x8x128xf32>
    %62 = vector.shape_cast %61 : vector<1x8x128xf32> to vector<8x128xf32>
    %63 = vector.shape_cast %60 : vector<8x128xf32> to vector<1x8x128xf32>
    tpu.vector_store %arg12[%c5_50, %c0_51, %c0_52], %63 {strides = array<i32>} : memref<8x8x128xf32, #tpu.memory_space<vmem>>, vector<1x8x128xf32>,
    %c6 = arith.constant 6 : index
    %c0_53 = arith.constant 0 : index
    %c0_54 = arith.constant 0 : index
    %64 = vector.load %arg12[%c6, %c0_53, %c0_54] : memref<8x8x128xf32, #tpu.memory_space<vmem>>, vector<1x8x128xf32>
    %65 = vector.shape_cast %64 : vector<1x8x128xf32> to vector<8x128xf32>
    %cst_55 = arith.constant dense<0.000000e+00> : vector<8x128xf32>
    %66 = tpu.matmul %60, %5, %cst_55 {dimension_numbers = #tpu.dot_dimension_numbers<[1], [0], [0], [1], [0, 0, 1, 1], [], []>} : vector<8x128xf32>, vector<128x128xf32>, vector<8x128xf32> -> vector<8x128xf32>
    %67 = arith.addf %65, %66 : vector<8x128xf32>
    %68 = math.tanh %67 : vector<8x128xf32>
    %c6_56 = arith.constant 6 : index
    %c0_57 = arith.constant 0 : index
    %c0_58 = arith.constant 0 : index
    %69 = vector.load %arg12[%c6_56, %c0_57, %c0_58] : memref<8x8x128xf32, #tpu.memory_space<vmem>>, vector<1x8x128xf32>
    %70 = vector.shape_cast %69 : vector<1x8x128xf32> to vector<8x128xf32>
    %71 = vector.shape_cast %68 : vector<8x128xf32> to vector<1x8x128xf32>
    tpu.vector_store %arg12[%c6_56, %c0_57, %c0_58], %71 {strides = array<i32>} : memref<8x8x128xf32, #tpu.memory_space<vmem>>, vector<1x8x128xf32>,
    %c7 = arith.constant 7 : index
    %c0_59 = arith.constant 0 : index
    %c0_60 = arith.constant 0 : index
    %72 = vector.load %arg12[%c7, %c0_59, %c0_60] : memref<8x8x128xf32, #tpu.memory_space<vmem>>, vector<1x8x128xf32>
    %73 = vector.shape_cast %72 : vector<1x8x128xf32> to vector<8x128xf32>
    %cst_61 = arith.constant dense<0.000000e+00> : vector<8x128xf32>
    %74 = tpu.matmul %68, %5, %cst_61 {dimension_numbers = #tpu.dot_dimension_numbers<[1], [0], [0], [1], [0, 0, 1, 1], [], []>} : vector<8x128xf32>, vector<128x128xf32>, vector<8x128xf32> -> vector<8x128xf32>
    %75 = arith.addf %73, %74 : vector<8x128xf32>
    %76 = math.tanh %75 : vector<8x128xf32>
    %c7_62 = arith.constant 7 : index
    %c0_63 = arith.constant 0 : index
    %c0_64 = arith.constant 0 : index
    %77 = vector.load %arg12[%c7_62, %c0_63, %c0_64] : memref<8x8x128xf32, #tpu.memory_space<vmem>>, vector<1x8x128xf32>
    %78 = vector.shape_cast %77 : vector<1x8x128xf32> to vector<8x128xf32>
    %79 = vector.shape_cast %76 : vector<8x128xf32> to vector<1x8x128xf32>
    tpu.vector_store %arg12[%c7_62, %c0_63, %c0_64], %79 {strides = array<i32>} : memref<8x8x128xf32, #tpu.memory_space<vmem>>, vector<1x8x128xf32>,
    %c0_65 = arith.constant 0 : index
    %c0_66 = arith.constant 0 : index
    %c0_67 = arith.constant 0 : index
    %80 = vector.load %arg13[%c0_65, %c0_66, %c0_67] : memref<2x8x128xf32, #tpu.memory_space<vmem>>, vector<1x8x128xf32>
    %81 = vector.shape_cast %80 : vector<1x8x128xf32> to vector<8x128xf32>
    %82 = vector.shape_cast %76 : vector<8x128xf32> to vector<1x8x128xf32>
    tpu.vector_store %arg13[%c0_65, %c0_66, %c0_67], %82 {strides = array<i32>} : memref<2x8x128xf32, #tpu.memory_space<vmem>>, vector<1x8x128xf32>,
    %c0_68 = arith.constant 0 : index
    %c0_69 = arith.constant 0 : index
    %83 = vector.load %arg6[%c0_68, %c0_69] : memref<128x128xf32, #tpu.memory_space<vmem>>, vector<128x128xf32>
    %c0_70 = arith.constant 0 : index
    %c0_71 = arith.constant 0 : index
    %84 = vector.load %arg7[%c0_70, %c0_71] : memref<128x128xf32, #tpu.memory_space<vmem>>, vector<128x128xf32>
    %c0_72 = arith.constant 0 : index
    %c0_73 = arith.constant 0 : index
    %85 = vector.load %arg8[%c0_72, %c0_73] : memref<1x128xf32, #tpu.memory_space<vmem>>, vector<1x128xf32>
    %c0_74 = arith.constant 0 : index
    %c0_75 = arith.constant 0 : index
    %c0_76 = arith.constant 0 : index
    %86 = vector.load %arg12[%c0_74, %c0_75, %c0_76] : memref<8x8x128xf32, #tpu.memory_space<vmem>>, vector<8x8x128xf32>
    %87 = vector.shape_cast %86 : vector<8x8x128xf32> to vector<64x128xf32>
    %cst_77 = arith.constant dense<0.000000e+00> : vector<64x128xf32>
    %88 = tpu.matmul %87, %83, %cst_77 {dimension_numbers = #tpu.dot_dimension_numbers<[1], [0], [0], [1], [0, 0, 1, 1], [], []>} : vector<64x128xf32>, vector<128x128xf32>, vector<64x128xf32> -> vector<64x128xf32>
    %89 = vector.broadcast %85 : vector<1x128xf32> to vector<64x128xf32>
    %90 = arith.addf %88, %89 : vector<64x128xf32>
    %91 = vector.shape_cast %90 : vector<64x128xf32> to vector<8x8x128xf32>
    %c0_78 = arith.constant 0 : index
    %c0_79 = arith.constant 0 : index
    %c0_80 = arith.constant 0 : index
    %92 = vector.load %arg12[%c0_78, %c0_79, %c0_80] : memref<8x8x128xf32, #tpu.memory_space<vmem>>, vector<8x8x128xf32>
    tpu.vector_store %arg12[%c0_78, %c0_79, %c0_80], %91 {strides = array<i32>} : memref<8x8x128xf32, #tpu.memory_space<vmem>>, vector<8x8x128xf32>,
    %c1_81 = arith.constant 1 : index
    %c0_82 = arith.constant 0 : index
    %c0_83 = arith.constant 0 : index
    %93 = vector.load %arg13[%c1_81, %c0_82, %c0_83] : memref<2x8x128xf32, #tpu.memory_space<vmem>>, vector<1x8x128xf32>
    %94 = vector.shape_cast %93 : vector<1x8x128xf32> to vector<8x128xf32>
    %c0_84 = arith.constant 0 : index
    %c0_85 = arith.constant 0 : index
    %c0_86 = arith.constant 0 : index
    %95 = vector.load %arg12[%c0_84, %c0_85, %c0_86] : memref<8x8x128xf32, #tpu.memory_space<vmem>>, vector<1x8x128xf32>
    %96 = vector.shape_cast %95 : vector<1x8x128xf32> to vector<8x128xf32>
    %cst_87 = arith.constant dense<0.000000e+00> : vector<8x128xf32>
    %97 = tpu.matmul %94, %84, %cst_87 {dimension_numbers = #tpu.dot_dimension_numbers<[1], [0], [0], [1], [0, 0, 1, 1], [], []>} : vector<8x128xf32>, vector<128x128xf32>, vector<8x128xf32> -> vector<8x128xf32>
    %98 = arith.addf %96, %97 : vector<8x128xf32>
    %99 = math.tanh %98 : vector<8x128xf32>
    %c1_88 = arith.constant 1 : index
    %c0_89 = arith.constant 0 : index
    %c0_90 = arith.constant 0 : index
    %100 = vector.load %arg12[%c1_88, %c0_89, %c0_90] : memref<8x8x128xf32, #tpu.memory_space<vmem>>, vector<1x8x128xf32>
    %101 = vector.shape_cast %100 : vector<1x8x128xf32> to vector<8x128xf32>
    %cst_91 = arith.constant dense<0.000000e+00> : vector<8x128xf32>
    %102 = tpu.matmul %99, %84, %cst_91 {dimension_numbers = #tpu.dot_dimension_numbers<[1], [0], [0], [1], [0, 0, 1, 1], [], []>} : vector<8x128xf32>, vector<128x128xf32>, vector<8x128xf32> -> vector<8x128xf32>
    %103 = arith.addf %101, %102 : vector<8x128xf32>
    %104 = math.tanh %103 : vector<8x128xf32>
    %c2_92 = arith.constant 2 : index
    %c0_93 = arith.constant 0 : index
    %c0_94 = arith.constant 0 : index
    %105 = vector.load %arg12[%c2_92, %c0_93, %c0_94] : memref<8x8x128xf32, #tpu.memory_space<vmem>>, vector<1x8x128xf32>
    %106 = vector.shape_cast %105 : vector<1x8x128xf32> to vector<8x128xf32>
    %cst_95 = arith.constant dense<0.000000e+00> : vector<8x128xf32>
    %107 = tpu.matmul %104, %84, %cst_95 {dimension_numbers = #tpu.dot_dimension_numbers<[1], [0], [0], [1], [0, 0, 1, 1], [], []>} : vector<8x128xf32>, vector<128x128xf32>, vector<8x128xf32> -> vector<8x128xf32>
    %108 = arith.addf %106, %107 : vector<8x128xf32>
    %109 = math.tanh %108 : vector<8x128xf32>
    %c3_96 = arith.constant 3 : index
    %c0_97 = arith.constant 0 : index
    %c0_98 = arith.constant 0 : index
    %110 = vector.load %arg12[%c3_96, %c0_97, %c0_98] : memref<8x8x128xf32, #tpu.memory_space<vmem>>, vector<1x8x128xf32>
    %111 = vector.shape_cast %110 : vector<1x8x128xf32> to vector<8x128xf32>
    %cst_99 = arith.constant dense<0.000000e+00> : vector<8x128xf32>
    %112 = tpu.matmul %109, %84, %cst_99 {dimension_numbers = #tpu.dot_dimension_numbers<[1], [0], [0], [1], [0, 0, 1, 1], [], []>} : vector<8x128xf32>, vector<128x128xf32>, vector<8x128xf32> -> vector<8x128xf32>
    %113 = arith.addf %111, %112 : vector<8x128xf32>
    %114 = math.tanh %113 : vector<8x128xf32>
    %c4_100 = arith.constant 4 : index
    %c0_101 = arith.constant 0 : index
    %c0_102 = arith.constant 0 : index
    %115 = vector.load %arg12[%c4_100, %c0_101, %c0_102] : memref<8x8x128xf32, #tpu.memory_space<vmem>>, vector<1x8x128xf32>
    %116 = vector.shape_cast %115 : vector<1x8x128xf32> to vector<8x128xf32>
    %cst_103 = arith.constant dense<0.000000e+00> : vector<8x128xf32>
    %117 = tpu.matmul %114, %84, %cst_103 {dimension_numbers = #tpu.dot_dimension_numbers<[1], [0], [0], [1], [0, 0, 1, 1], [], []>} : vector<8x128xf32>, vector<128x128xf32>, vector<8x128xf32> -> vector<8x128xf32>
    %118 = arith.addf %116, %117 : vector<8x128xf32>
    %119 = math.tanh %118 : vector<8x128xf32>
    %c5_104 = arith.constant 5 : index
    %c0_105 = arith.constant 0 : index
    %c0_106 = arith.constant 0 : index
    %120 = vector.load %arg12[%c5_104, %c0_105, %c0_106] : memref<8x8x128xf32, #tpu.memory_space<vmem>>, vector<1x8x128xf32>
    %121 = vector.shape_cast %120 : vector<1x8x128xf32> to vector<8x128xf32>
    %cst_107 = arith.constant dense<0.000000e+00> : vector<8x128xf32>
    %122 = tpu.matmul %119, %84, %cst_107 {dimension_numbers = #tpu.dot_dimension_numbers<[1], [0], [0], [1], [0, 0, 1, 1], [], []>} : vector<8x128xf32>, vector<128x128xf32>, vector<8x128xf32> -> vector<8x128xf32>
    %123 = arith.addf %121, %122 : vector<8x128xf32>
    %124 = math.tanh %123 : vector<8x128xf32>
    %c6_108 = arith.constant 6 : index
    %c0_109 = arith.constant 0 : index
    %c0_110 = arith.constant 0 : index
    %125 = vector.load %arg12[%c6_108, %c0_109, %c0_110] : memref<8x8x128xf32, #tpu.memory_space<vmem>>, vector<1x8x128xf32>
    %126 = vector.shape_cast %125 : vector<1x8x128xf32> to vector<8x128xf32>
    %cst_111 = arith.constant dense<0.000000e+00> : vector<8x128xf32>
    %127 = tpu.matmul %124, %84, %cst_111 {dimension_numbers = #tpu.dot_dimension_numbers<[1], [0], [0], [1], [0, 0, 1, 1], [], []>} : vector<8x128xf32>, vector<128x128xf32>, vector<8x128xf32> -> vector<8x128xf32>
    %128 = arith.addf %126, %127 : vector<8x128xf32>
    %129 = math.tanh %128 : vector<8x128xf32>
    %c7_112 = arith.constant 7 : index
    %c0_113 = arith.constant 0 : index
    %c0_114 = arith.constant 0 : index
    %130 = vector.load %arg12[%c7_112, %c0_113, %c0_114] : memref<8x8x128xf32, #tpu.memory_space<vmem>>, vector<1x8x128xf32>
    %131 = vector.shape_cast %130 : vector<1x8x128xf32> to vector<8x128xf32>
    %cst_115 = arith.constant dense<0.000000e+00> : vector<8x128xf32>
    %132 = tpu.matmul %129, %84, %cst_115 {dimension_numbers = #tpu.dot_dimension_numbers<[1], [0], [0], [1], [0, 0, 1, 1], [], []>} : vector<8x128xf32>, vector<128x128xf32>, vector<8x128xf32> -> vector<8x128xf32>
    %133 = arith.addf %131, %132 : vector<8x128xf32>
    %134 = math.tanh %133 : vector<8x128xf32>
    %135 = arith.extui %3 : i1 to i32
    %c0_i32_116 = arith.constant 0 : i32
    %136 = arith.cmpi ne, %135, %c0_i32_116 : i32
    scf.if %136 {
      %c0_120 = arith.constant 0 : index
      %c0_121 = arith.constant 0 : index
      %140 = vector.load %arg9[%c0_120, %c0_121] : memref<128x128xf32, #tpu.memory_space<vmem>>, vector<128x128xf32>
      %cst_122 = arith.constant dense<0.000000e+00> : vector<8x128xf32>
      %141 = tpu.matmul %134, %140, %cst_122 {dimension_numbers = #tpu.dot_dimension_numbers<[1], [0], [0], [1], [0, 0, 1, 1], [], []>} : vector<8x128xf32>, vector<128x128xf32>, vector<8x128xf32> -> vector<8x128xf32>
      %c0_123 = arith.constant 0 : index
      %c0_124 = arith.constant 0 : index
      %142 = vector.load %arg10[%c0_123, %c0_124] : memref<1x128xf32, #tpu.memory_space<vmem>>, vector<1x128xf32>
      %143 = vector.broadcast %142 : vector<1x128xf32> to vector<8x128xf32>
      %144 = arith.addf %141, %143 : vector<8x128xf32>
      %cst_125 = arith.constant 0.000000e+00 : f32
      %145 = vector.broadcast %cst_125 : f32 to vector<8x128xf32>
      %146 = arith.maximumf %144, %145 : vector<8x128xf32>
      %c0_126 = arith.constant 0 : index
      %c0_127 = arith.constant 0 : index
      %147 = vector.load %arg11[%c0_126, %c0_127] : memref<8x128xf32, #tpu.memory_space<vmem>>, vector<8x128xf32>
      tpu.vector_store %arg11[%c0_126, %c0_127], %146 {strides = array<i32>} : memref<8x128xf32, #tpu.memory_space<vmem>>, vector<8x128xf32>,
    } else {
    }
    %c1_117 = arith.constant 1 : index
    %c0_118 = arith.constant 0 : index
    %c0_119 = arith.constant 0 : index
    %137 = vector.load %arg13[%c1_117, %c0_118, %c0_119] : memref<2x8x128xf32, #tpu.memory_space<vmem>>, vector<1x8x128xf32>
    %138 = vector.shape_cast %137 : vector<1x8x128xf32> to vector<8x128xf32>
    %139 = vector.shape_cast %134 : vector<8x128xf32> to vector<1x8x128xf32>
    tpu.vector_store %arg13[%c1_117, %c0_118, %c0_119], %139 {strides = array<i32>} : memref<2x8x128xf32, #tpu.memory_space<vmem>>, vector<1x8x128xf32>,
    return
  }
  func.func @transform_0(%arg0: i32, %arg1: i32) -> (i32, i32, i32) {
    %c0_i32 = arith.constant 0 : i32
    %c0_i32_0 = arith.constant 0 : i32
    return %arg1, %arg0, %c0_i32 : i32, i32, i32
  }
  func.func @transform_1(%arg0: i32, %arg1: i32) -> (i32, i32) {
    %c0_i32 = arith.constant 0 : i32
    %c0_i32_0 = arith.constant 0 : i32
    %c0_i32_1 = arith.constant 0 : i32
    return %c0_i32, %c0_i32_0 : i32, i32
  }
  func.func @transform_2(%arg0: i32, %arg1: i32) -> (i32, i32) {
    %c0_i32 = arith.constant 0 : i32
    %c0_i32_0 = arith.constant 0 : i32
    %c0_i32_1 = arith.constant 0 : i32
    return %c0_i32, %c0_i32_0 : i32, i32
  }
  func.func @transform_3(%arg0: i32, %arg1: i32) -> (i32, i32) {
    %c0_i32 = arith.constant 0 : i32
    %c0_i32_0 = arith.constant 0 : i32
    %c0_i32_1 = arith.constant 0 : i32
    return %c0_i32, %c0_i32_0 : i32, i32
  }
  func.func @transform_4(%arg0: i32, %arg1: i32) -> (i32, i32) {
    %c0_i32 = arith.constant 0 : i32
    %c0_i32_0 = arith.constant 0 : i32
    %c0_i32_1 = arith.constant 0 : i32
    return %c0_i32, %c0_i32_0 : i32, i32
  }
  func.func @transform_5(%arg0: i32, %arg1: i32) -> (i32, i32) {
    %c0_i32 = arith.constant 0 : i32
    %c0_i32_0 = arith.constant 0 : i32
    %c0_i32_1 = arith.constant 0 : i32
    return %c0_i32, %c0_i32_0 : i32, i32
  }
  func.func @transform_6(%arg0: i32, %arg1: i32) -> (i32, i32) {
    %c0_i32 = arith.constant 0 : i32
    %c0_i32_0 = arith.constant 0 : i32
    %c0_i32_1 = arith.constant 0 : i32
    return %c0_i32, %c0_i32_0 : i32, i32
  }
  func.func @transform_7(%arg0: i32, %arg1: i32) -> (i32, i32) {
    %c0_i32 = arith.constant 0 : i32
    %c0_i32_0 = arith.constant 0 : i32
    %c0_i32_1 = arith.constant 0 : i32
    return %c0_i32, %c0_i32_0 : i32, i32
  }
  func.func @transform_8(%arg0: i32, %arg1: i32) -> (i32, i32) {
    %c0_i32 = arith.constant 0 : i32
    %c0_i32_0 = arith.constant 0 : i32
    %c0_i32_1 = arith.constant 0 : i32
    return %c0_i32, %c0_i32_0 : i32, i32
  }
  func.func @transform_9(%arg0: i32, %arg1: i32) -> (i32, i32) {
    %c0_i32 = arith.constant 0 : i32
    %c0_i32_0 = arith.constant 0 : i32
    return %arg0, %c0_i32 : i32, i32
  }
}

</mosaic_0001>

<bundles_post_ra>
// kernel: tpu_custom_call.1
= control target key start
LH: loop header
LB: loop body
LE: loop exit
PB: predicated region body
PF: predicated region fallthrough
CT: control target
= control target key end

     0   :  { %14 = vsyncpa [#allocation5], 0  ;;  %s3768_s0 = inlined_call_operand.hbm [shape: f32[8,8,128], index: 0, kind: input, shape index: {}]   ;;  %s3769_s1 = inlined_call_operand.hbm [shape: f32[128,128], index: 1, kind: input, shape index: {}]   ;;  %s3770_s2 = inlined_call_operand.hbm [shape: f32[128,128], index: 2, kind: input, shape index: {}]   ;;  %s3771_s3 = inlined_call_operand.vmem [shape: f32[1,128], index: 3, kind: input, shape index: {}]   ;;  %s3772_s4 = inlined_call_operand.hbm [shape: f32[128,128], index: 4, kind: input, shape index: {}]   ;;  %s3773_s5 = inlined_call_operand.hbm [shape: f32[128,128], index: 5, kind: input, shape index: {}]   ;;  %s3774_s6 = inlined_call_operand.vmem [shape: f32[1,128], index: 6, kind: input, shape index: {}]   ;;  %s3775_s7 = inlined_call_operand.hbm [shape: f32[128,128], index: 7, kind: input, shape index: {}]   ;;  %s3776_s8 = inlined_call_operand.vmem [shape: f32[1,128], index: 8, kind: input, shape index: {}]   ;;  %s3777_s9 = inlined_call_operand.hbm [shape: f32[8,128], index: 9, kind: output, shape index: {}]  }
   0x1   :  { %15 = vsyncpa [#allocation8], 0 }
   0x2   :  { %16 = vsyncpa [#allocation11], 0 }
   0x3   :  { %17 = vsyncpa [#allocation14], 0 }
   0x4   :  { %18 = vsyncpa [#allocation6], 0  ;;  %s2961_s30 = smov [#allocation7]   ;;  %s2962_s11 = smov [#allocation10]  }
   0x5   :  { %s36_s10 = sshll.u32 %s2961_s30, 4  ;;  %s62_s12 = sshll.u32 %s2962_s11, 4  ;;  %s37_s10 = int_to_ptr.vmem [resolvable:$true] %s36_s10  ;;  %s63_s12 = int_to_ptr.vmem [resolvable:$true] %s62_s12 }
   0x6   :  { %s2819_s13 = scalar_lea.vmem %s37_s10, 2048  ;;  %p2824_p1 = scmp.lt.s32.totalorder %s37_s10, %s37_s10 }
   0x7   :  { %p2820_p0 = scmp.ne.s32.totalorder %s37_s10, %s2819_s13  ;;  %p2825_p2 = scmp.lt.s32.totalorder %s2819_s13, %s2819_s13 }
   0x9   :  { %p2826_p3 = por %p2825_p2, %p2824_p1 }
   0xb   :  { %p2827_p4 = pnand %p2826_p3, %p2820_p0 }
   0xd   :  { %2830 = shalt.err (!%p2827_p4)
}
   0xe   :  { %s2963_s14 = smov 128   ;;  %s2964_s15 = smov 8  }
   0xf   :  { %42 = dma.hbm_to_vmem [thread:$0]  %s3769_s1, 2048, %s37_s10, [#allocation8], %s2963_s14, %s2963_s14, %s2964_s15  }
  0x10   :  { %s2839_s18 = scalar_lea.vmem %s63_s12, 2048  ;;  %p2844_p6 = scmp.lt.s32.totalorder %s63_s12, %s63_s12 }
  0x11   :  { %p2840_p5 = scmp.ne.s32.totalorder %s63_s12, %s2839_s18  ;;  %p2845_p7 = scmp.lt.s32.totalorder %s2839_s18, %s2839_s18 }
  0x13   :  { %p2846_p8 = por %p2845_p7, %p2844_p6 }
  0x15   :  { %p2847_p9 = pnand %p2846_p8, %p2840_p5 }
  0x17   :  { %2850 = shalt.err (!%p2847_p9)
}
  0x18   :  { %68 = dma.hbm_to_vmem [thread:$0]  %s3772_s4, 2048, %s63_s12, [#allocation11], %s2963_s14, %s2963_s14, %s2964_s15  }
  0x19   :  { %s2965_s21 = smov [#allocation4]   ;;  %s2966_s23 = smov [#allocation9]  }
  0x1a   :  { %s24_s22 = sshll.u32 %s2965_s21, 4  ;;  %s48_s24 = sshll.u32 %s2966_s23, 4  ;;  %s25_s22 = int_to_ptr.vmem [resolvable:$true] %s24_s22  ;;  %s49_s24 = int_to_ptr.vmem [resolvable:$true] %s48_s24 }
  0x1b   :  { %s2859_s1 = scalar_lea.vmem %s25_s22, 1024  ;;  %p2864_p11 = scmp.lt.s32.totalorder %s25_s22, %s25_s22 }
  0x1c   :  { %p2860_p10 = scmp.ne.s32.totalorder %s25_s22, %s2859_s1  ;;  %p2865_p12 = scmp.lt.s32.totalorder %s2859_s1, %s2859_s1 }
  0x1e   :  { %p2866_p13 = por %p2865_p12, %p2864_p11 }
  0x20   :  { %p2867_p0 = pnand %p2866_p13, %p2860_p10 }
  0x22   :  { %2870 = shalt.err (!%p2867_p0)
}
  0x23   :  { %30 = dma.hbm_to_vmem [thread:$0]  %s3768_s0, 1024, %s25_s22, [#allocation5], %s2963_s14, %s2963_s14, %s2964_s15  }
  0x24   :  { %s2879_s4 = scalar_lea.vmem %s49_s24, 2048  ;;  %p2884_p2 = scmp.lt.s32.totalorder %s49_s24, %s49_s24 }
  0x25   :  { %p2880_p1 = scmp.ne.s32.totalorder %s49_s24, %s2879_s4  ;;  %p2885_p3 = scmp.lt.s32.totalorder %s2879_s4, %s2879_s4 }
  0x27   :  { %p2886_p4 = por %p2885_p3, %p2884_p2 }
  0x29   :  { %p2887_p5 = pnand %p2886_p4, %p2880_p1 }
  0x2b   :  { %2890 = shalt.err (!%p2887_p5)
}
  0x2c   :  { %54 = dma.hbm_to_vmem [thread:$0]  %s3770_s2, 2048, %s49_s24, [#allocation8], %s2963_s14, %s2963_s14, %s2964_s15  }
  0x2d   :  { %s2967_s29 = smov [#allocation12]   ;;  %s2968_s10 = smov [#allocation13]  }
  0x2e   :  { %s74_s30 = sshll.u32 %s2967_s29, 4  ;;  %s88_s11 = sshll.u32 %s2968_s10, 4  ;;  %s75_s30 = int_to_ptr.vmem [resolvable:$true] %s74_s30  ;;  %s89_s11 = int_to_ptr.vmem [resolvable:$true] %s88_s11 }
  0x2f   :  { %s2899_s0 = scalar_lea.vmem %s75_s30, 2048  ;;  %p2904_p7 = scmp.lt.s32.totalorder %s75_s30, %s75_s30 }
  0x30   :  { %p2900_p6 = scmp.ne.s32.totalorder %s75_s30, %s2899_s0  ;;  %p2905_p8 = scmp.lt.s32.totalorder %s2899_s0, %s2899_s0 }
  0x32   :  { %p2906_p9 = por %p2905_p8, %p2904_p7 }
  0x34   :  { %p2907_p10 = pnand %p2906_p9, %p2900_p6 }
  0x36   :  { %2910 = shalt.err (!%p2907_p10)
}
  0x37   :  { %80 = dma.hbm_to_vmem [thread:$0]  %s3773_s5, 2048, %s75_s30, [#allocation11], %s2963_s14, %s2963_s14, %s2964_s15  }
  0x38   :  { %s2919_s2 = scalar_lea.vmem %s89_s11, 2048  ;;  %p2924_p12 = scmp.lt.s32.totalorder %s89_s11, %s89_s11 }
  0x39   :  { %p2920_p11 = scmp.ne.s32.totalorder %s89_s11, %s2919_s2  ;;  %p2925_p13 = scmp.lt.s32.totalorder %s2919_s2, %s2919_s2 }
  0x3b   :  { %p2926_p0 = por %p2925_p13, %p2924_p12 }
  0x3d   :  { %p2927_p1 = pnand %p2926_p0, %p2920_p11 }
  0x3f   :  { %2930 = shalt.err (!%p2927_p1)
}
  0x40   :  { %94 = dma.hbm_to_vmem [thread:$0]  %s3775_s7, 2048, %s89_s11, [#allocation14], %s2963_s14, %s2963_s14, %s2964_s15  }
  0x41   :  { %2951 = dma.done.wait [#allocation5], 1024  }
  0x42   :  { %2952 = vsyncadd [#allocation5], 4294966272 }
  0x43   :  { %2953 = dma.done.wait [#allocation8], 4096  }
  0x44   :  { %2954 = vsyncadd [#allocation8], 4294963200 }
  0x45   :  { %2955 = dma.done.wait [#allocation11], 4096  }
  0x46   :  { %2956 = vsyncadd [#allocation11], 4294963200 }
  0x47   :  { %2957 = dma.done.wait [#allocation14], 2048  }
  0x48   :  { %2958 = vsyncadd [#allocation14], 4294965248  ;;  %v2969_v0 = vmov 0.0   ;;  %vm2970_vm0 = vmmov 0   ;;  %v136_v1 = vld [vmem:[#allocation7 + $0x78] sm:$0xff]  ;;  %v135_v2 = vld [vmem:[#allocation7 + $0x70] sm:$0xff] }
  0x49   :  { %2129 = vmatprep.subr.mxu1 %v2969_v0  ;;  %2161 = vmatprep.mubr.msk.f32.mxu1 %vm2970_vm0, %v2969_v0  ;;  %v3061_v3 = vld [vmem:[#allocation9 + $0x78] sm:$0xff]  ;;  %v3064_v4 = vld [vmem:[#allocation9 + $0x70] sm:$0xff]  ;;  %v134_v5 = vld [vmem:[#allocation7 + $0x68] sm:$0xff]  ;;  %s2971_s18 = smov [#allocation15]  }
  0x4a   :  { %2085 = vmatprep.subr.mxu0 %v136_v1  ;;  %2130 = vmatpush3.msra.mxu1 %v3061_v3  ;;  %v3067_v6 = vld [vmem:[#allocation9 + $0x68] sm:$0xff]  ;;  %v133_v7 = vld [vmem:[#allocation7 + $0x60] sm:$0xff]  ;;  %v132_v9 = vld [vmem:[#allocation7 + $0x58] sm:$0xff]  ;;  %s1733_s19 = sshll.u32 %s2971_s18, 4  ;;  %s1734_s19 = int_to_ptr.vmem [resolvable:$true] %s1733_s19 }
  0x4b   :  { %2086 = vmatpush3.msra.mxu0 %v136_v1  ;;  %2131 = vmatprep.subr.mxu1 %v2969_v0  ;;  %v3071_v8 = vld [vmem:[#allocation9 + $0x60] sm:$0xff]  ;;  %v3075_v10 = vld [vmem:[#allocation9 + $0x58] sm:$0xff]  ;;  %v131_v11 = vld [vmem:[#allocation7 + $0x50] sm:$0xff]  ;;  %s2931_s20 = scalar_lea.vmem %s1734_s19, 128  ;;  %p2936_p3 = scmp.lt.s32.totalorder %s1734_s19, %s1734_s19 }
  0x4c   :  { %2087 = vmatprep.subr.mxu0 %v135_v2  ;;  %2132 = vmatpush3.msra.mxu1 %v3064_v4  ;;  %v3079_v12 = vld [vmem:[#allocation9 + $0x50] sm:$0xff]  ;;  %v130_v13 = vld [vmem:[#allocation7 + $0x48] sm:$0xff]  ;;  %v129_v15 = vld [vmem:[#allocation7 + $0x40] sm:$0xff]  ;;  %p2932_p2 = scmp.ne.s32.totalorder %s1734_s19, %s2931_s20  ;;  %p2937_p4 = scmp.lt.s32.totalorder %s2931_s20, %s2931_s20 }
  0x4d   :  { %2088 = vmatpush3.msra.mxu0 %v135_v2  ;;  %2133 = vmatprep.subr.mxu1 %v2969_v0  ;;  %v3083_v14 = vld [vmem:[#allocation9 + $0x48] sm:$0xff]  ;;  %v3087_v16 = vld [vmem:[#allocation9 + $0x40] sm:$0xff]  ;;  %v128_v17 = vld [vmem:[#allocation7 + $0x38] sm:$0xff] }
  0x4e   :  { %2089 = vmatprep.subr.mxu0 %v134_v5  ;;  %2134 = vmatpush3.msra.mxu1 %v3067_v6  ;;  %v3091_v18 = vld [vmem:[#allocation9 + $0x38] sm:$0xff]  ;;  %v127_v19 = vld [vmem:[#allocation7 + $0x30] sm:$0xff]  ;;  %v126_v21 = vld [vmem:[#allocation7 + $0x28] sm:$0xff]  ;;  %p2938_p5 = por %p2937_p4, %p2936_p3 }
  0x4f   :  { %2090 = vmatpush3.msra.mxu0 %v134_v5  ;;  %2135 = vmatprep.subr.mxu1 %v2969_v0  ;;  %v3095_v20 = vld [vmem:[#allocation9 + $0x30] sm:$0xff]  ;;  %v3099_v22 = vld [vmem:[#allocation9 + $0x28] sm:$0xff]  ;;  %v125_v23 = vld [vmem:[#allocation7 + $0x20] sm:$0xff] }
  0x50   :  { %2091 = vmatprep.subr.mxu0 %v133_v7  ;;  %2136 = vmatpush3.msra.mxu1 %v3071_v8  ;;  %v3103_v24 = vld [vmem:[#allocation9 + $0x20] sm:$0xff]  ;;  %v124_v25 = vld [vmem:[#allocation7 + $0x18] sm:$0xff]  ;;  %v123_v27 = vld [vmem:[#allocation7 + $0x10] sm:$0xff]  ;;  %p2939_p6 = pnand %p2938_p5, %p2932_p2 }
  0x51   :  { %2092 = vmatpush3.msra.mxu0 %v133_v7  ;;  %2137 = vmatprep.subr.mxu1 %v2969_v0  ;;  %v3107_v26 = vld [vmem:[#allocation9 + $0x18] sm:$0xff]  ;;  %v3111_v28 = vld [vmem:[#allocation9 + $0x10] sm:$0xff]  ;;  %v122_v29 = vld [vmem:[#allocation7 + $0x8] sm:$0xff] }
  0x52   :  { %2093 = vmatprep.subr.mxu0 %v132_v9  ;;  %2138 = vmatpush3.msra.mxu1 %v3075_v10  ;;  %v154_v30 = vld [vmem:[#allocation4] sm:$0xff]  ;;  %v3116_v31 = vld [vmem:[#allocation9 + $0x8] sm:$0xff]  ;;  %v156_v35 = vld [vmem:[#allocation4 + $0x10] sm:$0xff] }
  0x53   :  { %2094 = vmatpush3.msra.mxu0 %v132_v9  ;;  %2139 = vmatprep.subr.mxu1 %v2969_v0  ;;  %v121_v32 = vld [vmem:[#allocation7] sm:$0xff]  ;;  %v155_v34 = vld [vmem:[#allocation4 + $0x8] sm:$0xff]  ;;  %v157_v36 = vld [vmem:[#allocation4 + $0x18] sm:$0xff] }
  0x54   :  { %2095 = vmatprep.subr.mxu0 %v131_v11  ;;  %2140 = vmatpush3.msra.mxu1 %v3079_v12  ;;  %v3119_v33 = vld [vmem:[#allocation9] sm:$0xff]  ;;  %v159_v38 = vld [vmem:[#allocation4 + $0x28] sm:$0xff]  ;;  %v160_v39 = vld [vmem:[#allocation4 + $0x30] sm:$0xff] }
  0x55   :  { %2096 = vmatpush3.msra.mxu0 %v131_v11  ;;  %2141 = vmatprep.subr.mxu1 %v2969_v0  ;;  %v158_v37 = vld [vmem:[#allocation4 + $0x20] sm:$0xff]  ;;  %v161_v40 = vld [vmem:[#allocation4 + $0x38] sm:$0xff] }
  0x56   :  { %2097 = vmatprep.subr.mxu0 %v130_v13  ;;  %2142 = vmatpush3.msra.mxu1 %v3083_v14  ;;  %v3198_v43 = vld [vmem:[%s3771_s3] ss:$0 sm:$0xff] }
  0x57   :  { %2098 = vmatpush3.msra.mxu0 %v130_v13  ;;  %2143 = vmatprep.subr.mxu1 %v2969_v0 }
  0x58   :  { %2099 = vmatprep.subr.mxu0 %v129_v15  ;;  %2144 = vmatpush3.msra.mxu1 %v3087_v16 }
  0x59   :  { %2100 = vmatpush3.msra.mxu0 %v129_v15  ;;  %2145 = vmatprep.subr.mxu1 %v2969_v0 }
  0x5a   :  { %2101 = vmatprep.subr.mxu0 %v128_v17  ;;  %2146 = vmatpush3.msra.mxu1 %v3091_v18 }
  0x5b   :  { %2102 = vmatpush3.msra.mxu0 %v128_v17  ;;  %2147 = vmatprep.subr.mxu1 %v2969_v0 }
  0x5c   :  { %2103 = vmatprep.subr.mxu0 %v127_v19  ;;  %2148 = vmatpush3.msra.mxu1 %v3095_v20 }
  0x5d   :  { %2104 = vmatpush3.msra.mxu0 %v127_v19  ;;  %2149 = vmatprep.subr.mxu1 %v2969_v0 }
  0x5e   :  { %2105 = vmatprep.subr.mxu0 %v126_v21  ;;  %2150 = vmatpush3.msra.mxu1 %v3099_v22 }
  0x5f   :  { %2106 = vmatpush3.msra.mxu0 %v126_v21  ;;  %2151 = vmatprep.subr.mxu1 %v2969_v0 }
  0x60   :  { %2107 = vmatprep.subr.mxu0 %v125_v23  ;;  %2152 = vmatpush3.msra.mxu1 %v3103_v24 }
  0x61   :  { %2108 = vmatpush3.msra.mxu0 %v125_v23  ;;  %2153 = vmatprep.subr.mxu1 %v2969_v0  ;;  %v891_v23 = vld [vmem:[#allocation10 + $0x48] sm:$0xff] }
  0x62   :  { %2109 = vmatprep.subr.mxu0 %v124_v25  ;;  %2154 = vmatpush3.msra.mxu1 %v3107_v26 }
  0x63   :  { %2110 = vmatpush3.msra.mxu0 %v124_v25  ;;  %2155 = vmatprep.subr.mxu1 %v2969_v0  ;;  %v889_v25 = vld [vmem:[#allocation10 + $0x38] sm:$0xff] }
  0x64   :  { %2111 = vmatprep.subr.mxu0 %v123_v27  ;;  %2156 = vmatpush3.msra.mxu1 %v3111_v28 }
  0x65   :  { %2112 = vmatpush3.msra.mxu0 %v123_v27  ;;  %2157 = vmatprep.subr.mxu1 %v2969_v0  ;;  %v887_v27 = vld [vmem:[#allocation10 + $0x28] sm:$0xff] }
  0x66   :  { %2113 = vmatprep.subr.mxu0 %v122_v29  ;;  %2117 = vmatprep.mubr.f32.mxu0 %v154_v30  ;;  %v884_v30 = vld [vmem:[#allocation10 + $0x10] sm:$0xff] }
  0x67   :  { %2114 = vmatpush3.msra.mxu0 %v122_v29  ;;  %2158 = vmatpush3.msra.mxu1 %v3116_v31  ;;  %v885_v29 = vld [vmem:[#allocation10 + $0x18] sm:$0xff] }
  0x68   :  { %2115 = vmatprep.subr.mxu0 %v121_v32  ;;  %2159 = vmatprep.subr.mxu1 %v2969_v0 }
  0x69   :  { %2116 = vmatpush3.msra.mxu0 %v121_v32  ;;  %2160 = vmatpush3.msra.mxu1 %v3119_v33  ;;  %v882_v32 = vld [vmem:[#allocation10] sm:$0xff] }
  0x6a   :  { %2118 = vmatmul.mubr.f32.vlgmr.msra.gmra.mxu0 %v155_v34  ;;  %2162 = vmatmul.mubr.f32.vlgmr.msra.gmra.mxu1 %v2969_v0  ;;  %v3412_v34 = vld [vmem:[#allocation12 + $0x70] sm:$0xff] }
  0x6b   :  { %2164 = vmatprep.subr.mxu0 %v2969_v0  ;;  %2199 = vmatprep.subr.mxu1 %v2969_v0 }
  0x6c   :  { %2165 = vmatpush3.msra.mxu0 %v3061_v3  ;;  %2200 = vmatpush3.msra.mxu1 %v3061_v3 }
  0x6d   :  { %2166 = vmatprep.subr.mxu0 %v2969_v0  ;;  %2201 = vmatprep.subr.mxu1 %v2969_v0 }
  0x6e   :  { %2167 = vmatpush3.msra.mxu0 %v3064_v4  ;;  %2202 = vmatpush3.msra.mxu1 %v3064_v4 }
  0x6f   :  { %2168 = vmatprep.subr.mxu0 %v2969_v0  ;;  %2203 = vmatprep.subr.mxu1 %v2969_v0 }
  0x70   :  { %2169 = vmatpush3.msra.mxu0 %v3067_v6  ;;  %2204 = vmatpush3.msra.mxu1 %v3067_v6 }
  0x71   :  { %2170 = vmatprep.subr.mxu0 %v2969_v0  ;;  %2205 = vmatprep.subr.mxu1 %v2969_v0 }
  0x72   :  { %2171 = vmatpush3.msra.mxu0 %v3071_v8  ;;  %2206 = vmatpush3.msra.mxu1 %v3071_v8 }
  0x73   :  { %2172 = vmatprep.subr.mxu0 %v2969_v0  ;;  %2207 = vmatprep.subr.mxu1 %v2969_v0 }
  0x74   :  { %2173 = vmatpush3.msra.mxu0 %v3075_v10  ;;  %2208 = vmatpush3.msra.mxu1 %v3075_v10 }
  0x75   :  { %2174 = vmatprep.subr.mxu0 %v2969_v0  ;;  %2209 = vmatprep.subr.mxu1 %v2969_v0 }
  0x76   :  { %2175 = vmatpush3.msra.mxu0 %v3079_v12  ;;  %2210 = vmatpush3.msra.mxu1 %v3079_v12 }
  0x77   :  { %2176 = vmatprep.subr.mxu0 %v2969_v0  ;;  %2211 = vmatprep.subr.mxu1 %v2969_v0 }
  0x78   :  { %2177 = vmatpush3.msra.mxu0 %v3083_v14  ;;  %2212 = vmatpush3.msra.mxu1 %v3083_v14 }
  0x79   :  { %2178 = vmatprep.subr.mxu0 %v2969_v0  ;;  %2213 = vmatprep.subr.mxu1 %v2969_v0 }
  0x7a   :  { %2179 = vmatpush3.msra.mxu0 %v3087_v16  ;;  %2214 = vmatpush3.msra.mxu1 %v3087_v16 }
  0x7b   :  { %2180 = vmatprep.subr.mxu0 %v2969_v0  ;;  %2215 = vmatprep.subr.mxu1 %v2969_v0 }
  0x7c   :  { %2181 = vmatpush3.msra.mxu0 %v3091_v18  ;;  %2216 = vmatpush3.msra.mxu1 %v3091_v18 }
  0x7d   :  { %2182 = vmatprep.subr.mxu0 %v2969_v0  ;;  %2217 = vmatprep.subr.mxu1 %v2969_v0 }
  0x7e   :  { %2183 = vmatpush3.msra.mxu0 %v3095_v20  ;;  %2218 = vmatpush3.msra.mxu1 %v3095_v20 }
  0x7f   :  { %2184 = vmatprep.subr.mxu0 %v2969_v0  ;;  %2219 = vmatprep.subr.mxu1 %v2969_v0 }
  0x80   :  { %2185 = vmatpush3.msra.mxu0 %v3099_v22  ;;  %2220 = vmatpush3.msra.mxu1 %v3099_v22 }
  0x81   :  { %2186 = vmatprep.subr.mxu0 %v2969_v0  ;;  %2221 = vmatprep.subr.mxu1 %v2969_v0 }
  0x82   :  { %2187 = vmatpush3.msra.mxu0 %v3103_v24  ;;  %2222 = vmatpush3.msra.mxu1 %v3103_v24 }
  0x83   :  { %2188 = vmatprep.subr.mxu0 %v2969_v0  ;;  %2223 = vmatprep.subr.mxu1 %v2969_v0 }
  0x84   :  { %2189 = vmatpush3.msra.mxu0 %v3107_v26  ;;  %2224 = vmatpush3.msra.mxu1 %v3107_v26 }
  0x85   :  { %2190 = vmatprep.subr.mxu0 %v2969_v0  ;;  %2225 = vmatprep.subr.mxu1 %v2969_v0 }
  0x86   :  { %2191 = vmatpush3.msra.mxu0 %v3111_v28  ;;  %2226 = vmatpush3.msra.mxu1 %v3111_v28 }
  0x87   :  { %2192 = vmatprep.subr.mxu0 %v2969_v0  ;;  %2227 = vmatprep.subr.mxu1 %v2969_v0 }
  0x88   :  { %2193 = vmatpush3.msra.mxu0 %v3116_v31  ;;  %2228 = vmatpush3.msra.mxu1 %v3116_v31 }
  0x89   :  { %2194 = vmatprep.subr.mxu0 %v2969_v0  ;;  %2229 = vmatprep.subr.mxu1 %v2969_v0 }
  0x8a   :  { %2195 = vmatpush3.msra.mxu0 %v3119_v33  ;;  %2230 = vmatpush3.msra.mxu1 %v3119_v33 }
  0x8b   :  { %2231 = vmatprep.mubr.msk.f32.mxu1 %vm2970_vm0, %v2969_v0  ;;  %2234 = vmatprep.subr.mxu0 %v2969_v0 }
  0x8c   :  { %2269 = vmatprep.subr.mxu1 %v2969_v0  ;;  %2120 = vmatprep.mubr.f32.mxu0 %v156_v35  ;;  %v3416_v35 = vld [vmem:[#allocation12 + $0x68] sm:$0xff] }
  0x8d   :  { %2121 = vmatmul.mubr.f32.gmra.mxu0 %v157_v36  ;;  %v3420_v36 = vld [vmem:[#allocation12 + $0x60] sm:$0xff] }
  0x8e   :  { %2123 = vmatprep.mubr.f32.mxu0 %v158_v37  ;;  %v3424_v37 = vld [vmem:[#allocation12 + $0x58] sm:$0xff] }
  0x91   :  { %2124 = vmatmul.mubr.f32.gmra.mxu0 %v159_v38  ;;  %v3428_v38 = vld [vmem:[#allocation12 + $0x50] sm:$0xff] }
  0x92   :  { %2126 = vmatprep.mubr.f32.mxu0 %v160_v39  ;;  %v3432_v39 = vld [vmem:[#allocation12 + $0x48] sm:$0xff] }
  0x95   :  { %2127 = vmatmul.mubr.f32.gmra.mxu0 %v161_v40  ;;  %v3436_v40 = vld [vmem:[#allocation12 + $0x40] sm:$0xff] }
  0x96   :  { %2196 = vmatprep.mubr.msk.f32.mxu0 %vm2970_vm0, %v2969_v0 }
 0x12a   :  { %v2119_v41 = vpop.f32.mrf.mxu0  ;;  %v349_v42 = vpop.f32.mrf.mxu1 }
 0x12b   :  { %v240_v55 = vadd.f32 %v2119_v41, %v3198_v43  ;;  %v3440_v41 = vld [vmem:[#allocation12 + $0x38] sm:$0xff] }
 0x12c   :  { %v234_v44 = vpop.f32.mrf.mxu0  ;;  %v2163_v45 = vpop.f32.mrf.mxu1 }
 0x12d   :  { %v235_v46 = vadd.f32 %v3198_v43, %v234_v44  ;;  %v3448_v44 = vld [vmem:[#allocation12 + $0x28] sm:$0xff]  ;;  %v3452_v45 = vld [vmem:[#allocation12 + $0x20] sm:$0xff] }
 0x12f   :  { %v353_v47 = vadd.f32 %v349_v42, %v235_v46  ;;  %v3444_v42 = vld [vmem:[#allocation12 + $0x30] sm:$0xff]  ;;  %v3456_v46 = vld [vmem:[#allocation12 + $0x18] sm:$0xff] }
 0x131   :  { %2779 = vtanh.f32 %v353_v47  ;;  %v3460_v47 = vld [vmem:[#allocation12 + $0x10] sm:$0xff] }
 0x13e   :  { %v3201_v48 = vpop.eup %2779 }
 0x13f   :  { %2197 = vmatmul.mubr.f32.vlgmr.msra.gmra.mxu0 %v3201_v48 }
 0x140   :  { %2235 = vmatpush3.msra.mxu0 %v3061_v3  ;;  %2266 = vmatprep.mubr.msk.f32.mxu0 %vm2970_vm0, %v2969_v0 }
 0x141   :  { %2236 = vmatprep.subr.mxu0 %v2969_v0 }
 0x142   :  { %2237 = vmatpush3.msra.mxu0 %v3064_v4 }
 0x143   :  { %2238 = vmatprep.subr.mxu0 %v2969_v0 }
 0x144   :  { %2239 = vmatpush3.msra.mxu0 %v3067_v6 }
 0x145   :  { %2240 = vmatprep.subr.mxu0 %v2969_v0 }
 0x146   :  { %2241 = vmatpush3.msra.mxu0 %v3071_v8 }
 0x147   :  { %2242 = vmatprep.subr.mxu0 %v2969_v0 }
 0x148   :  { %2243 = vmatpush3.msra.mxu0 %v3075_v10 }
 0x149   :  { %2244 = vmatprep.subr.mxu0 %v2969_v0 }
 0x14a   :  { %2245 = vmatpush3.msra.mxu0 %v3079_v12 }
 0x14b   :  { %2246 = vmatprep.subr.mxu0 %v2969_v0 }
 0x14c   :  { %2247 = vmatpush3.msra.mxu0 %v3083_v14 }
 0x14d   :  { %2248 = vmatprep.subr.mxu0 %v2969_v0  ;;  %v3238_v49 = vpop.f32.mrf.mxu0 }
 0x14e   :  { %2249 = vmatpush3.msra.mxu0 %v3087_v16  ;;  %v250_v2 = vadd.f32 %v3238_v49, %v3198_v43  ;;  %v3468_v49 = vld [vmem:[#allocation12] sm:$0xff] }
 0x14f   :  { %2250 = vmatprep.subr.mxu0 %v2969_v0  ;;  %v244_v50 = vpop.f32.mrf.mxu0 }
 0x150   :  { %2251 = vmatpush3.msra.mxu0 %v3091_v18  ;;  %v245_v60 = vadd.f32 %v3198_v43, %v244_v50 }
 0x151   :  { %2252 = vmatprep.subr.mxu0 %v2969_v0  ;;  %v3240_v51 = vpop.f32.mrf.mxu0 }
 0x152   :  { %2253 = vmatpush3.msra.mxu0 %v3095_v20 }
 0x153   :  { %2254 = vmatprep.subr.mxu0 %v2969_v0  ;;  %v3242_v52 = vpop.f32.mrf.mxu0 }
 0x154   :  { %2255 = vmatpush3.msra.mxu0 %v3099_v22  ;;  %v255_v13 = vadd.f32 %v3198_v43, %v3242_v52 }
 0x155   :  { %2256 = vmatprep.subr.mxu0 %v2969_v0  ;;  %v3244_v53 = vpop.f32.mrf.mxu0 }
 0x156   :  { %2257 = vmatpush3.msra.mxu0 %v3103_v24 }
 0x157   :  { %2258 = vmatprep.subr.mxu0 %v2969_v0  ;;  %v3246_v54 = vpop.f32.mrf.mxu0 }
 0x158   :  { %2259 = vmatpush3.msra.mxu0 %v3107_v26  ;;  %v265_v50 = vadd.f32 %v3198_v43, %v3246_v54  ;;  %v270_v54 = vadd.f32 %v3244_v53, %v3198_v43 }
 0x159   :  { %2260 = vmatprep.subr.mxu0 %v2969_v0 }
 0x15a   :  { %2261 = vmatpush3.msra.mxu0 %v3111_v28 }
 0x15b   :  { %2262 = vmatprep.subr.mxu0 %v2969_v0 }
 0x15c   :  { %2263 = vmatpush3.msra.mxu0 %v3116_v31 }
 0x15d   :  { %2264 = vmatprep.subr.mxu0 %v2969_v0 }
 0x15e   :  { %2265 = vmatpush3.msra.mxu0 %v3119_v33 }
 0x15f   :  { %2304 = vmatprep.subr.mxu0 %v2969_v0 }
 0x1ff   :  { %v424_v56 = vpop.f32.mrf.mxu0 }
 0x200   :  { %v428_v57 = vadd.f32 %v424_v56, %v240_v55 }
 0x201   :  { %v2198_v58 = vpop.f32.mrf.mxu0 }
 0x202   :  { %2781 = vtanh.f32 %v428_v57 }
 0x20f   :  { %v3249_v59 = vpop.eup %2781 }
 0x210   :  { %2232 = vmatmul.mubr.f32.vlgmr.msra.gmra.mxu1 %v3249_v59 }
 0x211   :  { %2270 = vmatpush3.msra.mxu1 %v3061_v3  ;;  %2301 = vmatprep.mubr.msk.f32.mxu1 %vm2970_vm0, %v2969_v0 }
 0x212   :  { %2271 = vmatprep.subr.mxu1 %v2969_v0 }
 0x213   :  { %2272 = vmatpush3.msra.mxu1 %v3064_v4 }
 0x214   :  { %2273 = vmatprep.subr.mxu1 %v2969_v0 }
 0x215   :  { %2274 = vmatpush3.msra.mxu1 %v3067_v6 }
 0x216   :  { %2275 = vmatprep.subr.mxu1 %v2969_v0 }
 0x217   :  { %2276 = vmatpush3.msra.mxu1 %v3071_v8 }
 0x218   :  { %2277 = vmatprep.subr.mxu1 %v2969_v0 }
 0x219   :  { %2278 = vmatpush3.msra.mxu1 %v3075_v10 }
 0x21a   :  { %2279 = vmatprep.subr.mxu1 %v2969_v0 }
 0x21b   :  { %2280 = vmatpush3.msra.mxu1 %v3079_v12 }
 0x21c   :  { %2281 = vmatprep.subr.mxu1 %v2969_v0 }
 0x21d   :  { %2282 = vmatpush3.msra.mxu1 %v3083_v14 }
 0x21e   :  { %2283 = vmatprep.subr.mxu1 %v2969_v0 }
 0x21f   :  { %2284 = vmatpush3.msra.mxu1 %v3087_v16 }
 0x220   :  { %2285 = vmatprep.subr.mxu1 %v2969_v0 }
 0x221   :  { %2286 = vmatpush3.msra.mxu1 %v3091_v18 }
 0x222   :  { %2287 = vmatprep.subr.mxu1 %v2969_v0 }
 0x223   :  { %2288 = vmatpush3.msra.mxu1 %v3095_v20 }
 0x224   :  { %2289 = vmatprep.subr.mxu1 %v2969_v0 }
 0x225   :  { %2290 = vmatpush3.msra.mxu1 %v3099_v22 }
 0x226   :  { %2291 = vmatprep.subr.mxu1 %v2969_v0 }
 0x227   :  { %2292 = vmatpush3.msra.mxu1 %v3103_v24 }
 0x228   :  { %2293 = vmatprep.subr.mxu1 %v2969_v0 }
 0x229   :  { %2294 = vmatpush3.msra.mxu1 %v3107_v26 }
 0x22a   :  { %2295 = vmatprep.subr.mxu1 %v2969_v0 }
 0x22b   :  { %2296 = vmatpush3.msra.mxu1 %v3111_v28 }
 0x22c   :  { %2297 = vmatprep.subr.mxu1 %v2969_v0 }
 0x22d   :  { %2298 = vmatpush3.msra.mxu1 %v3116_v31 }
 0x22e   :  { %2299 = vmatprep.subr.mxu1 %v2969_v0 }
 0x22f   :  { %2300 = vmatpush3.msra.mxu1 %v3119_v33 }
 0x230   :  { %2339 = vmatprep.subr.mxu1 %v2969_v0 }
 0x2d0   :  { %v499_v61 = vpop.f32.mrf.mxu1 }
 0x2d1   :  { %v503_v62 = vadd.f32 %v499_v61, %v245_v60 }
 0x2d2   :  { %v2233_v63 = vpop.f32.mrf.mxu1 }
 0x2d3   :  { %2783 = vtanh.f32 %v503_v62  ;;  %v3551_v63 = vld [vmem:[%s3774_s6] ss:$0 sm:$0xff] }
 0x2e0   :  { %v3287_v1 = vpop.eup %2783 }
 0x2e1   :  { %2267 = vmatmul.mubr.f32.vlgmr.msra.gmra.mxu0 %v3287_v1 }
 0x2e2   :  { %2305 = vmatpush3.msra.mxu0 %v3061_v3  ;;  %2336 = vmatprep.mubr.msk.f32.mxu0 %vm2970_vm0, %v2969_v0 }
 0x2e3   :  { %2306 = vmatprep.subr.mxu0 %v2969_v0 }
 0x2e4   :  { %2307 = vmatpush3.msra.mxu0 %v3064_v4 }
 0x2e5   :  { %2308 = vmatprep.subr.mxu0 %v2969_v0 }
 0x2e6   :  { %2309 = vmatpush3.msra.mxu0 %v3067_v6 }
 0x2e7   :  { %2310 = vmatprep.subr.mxu0 %v2969_v0 }
 0x2e8   :  { %2311 = vmatpush3.msra.mxu0 %v3071_v8 }
 0x2e9   :  { %2312 = vmatprep.subr.mxu0 %v2969_v0 }
 0x2ea   :  { %2313 = vmatpush3.msra.mxu0 %v3075_v10 }
 0x2eb   :  { %2314 = vmatprep.subr.mxu0 %v2969_v0 }
 0x2ec   :  { %2315 = vmatpush3.msra.mxu0 %v3079_v12 }
 0x2ed   :  { %2316 = vmatprep.subr.mxu0 %v2969_v0 }
 0x2ee   :  { %2317 = vmatpush3.msra.mxu0 %v3083_v14 }
 0x2ef   :  { %2318 = vmatprep.subr.mxu0 %v2969_v0 }
 0x2f0   :  { %2319 = vmatpush3.msra.mxu0 %v3087_v16 }
 0x2f1   :  { %2320 = vmatprep.subr.mxu0 %v2969_v0 }
 0x2f2   :  { %2321 = vmatpush3.msra.mxu0 %v3091_v18 }
 0x2f3   :  { %2322 = vmatprep.subr.mxu0 %v2969_v0 }
 0x2f4   :  { %2323 = vmatpush3.msra.mxu0 %v3095_v20 }
 0x2f5   :  { %2324 = vmatprep.subr.mxu0 %v2969_v0 }
 0x2f6   :  { %2325 = vmatpush3.msra.mxu0 %v3099_v22 }
 0x2f7   :  { %2326 = vmatprep.subr.mxu0 %v2969_v0 }
 0x2f8   :  { %2327 = vmatpush3.msra.mxu0 %v3103_v24 }
 0x2f9   :  { %2328 = vmatprep.subr.mxu0 %v2969_v0 }
 0x2fa   :  { %2329 = vmatpush3.msra.mxu0 %v3107_v26 }
 0x2fb   :  { %2330 = vmatprep.subr.mxu0 %v2969_v0 }
 0x2fc   :  { %2331 = vmatpush3.msra.mxu0 %v3111_v28 }
 0x2fd   :  { %2332 = vmatprep.subr.mxu0 %v2969_v0 }
 0x2fe   :  { %2333 = vmatpush3.msra.mxu0 %v3116_v31 }
 0x2ff   :  { %2334 = vmatprep.subr.mxu0 %v2969_v0 }
 0x300   :  { %2335 = vmatpush3.msra.mxu0 %v3119_v33 }
 0x301   :  { %2374 = vmatprep.subr.mxu0 %v2969_v0 }
 0x3a1   :  { %v574_v5 = vpop.f32.mrf.mxu0 }
 0x3a2   :  { %v578_v7 = vadd.f32 %v574_v5, %v250_v2 }
 0x3a3   :  { %v2268_v9 = vpop.f32.mrf.mxu0 }
 0x3a4   :  { %2785 = vtanh.f32 %v578_v7 }
 0x3b1   :  { %v3326_v11 = vpop.eup %2785 }
 0x3b2   :  { %2302 = vmatmul.mubr.f32.vlgmr.msra.gmra.mxu1 %v3326_v11 }
 0x3b3   :  { %2340 = vmatpush3.msra.mxu1 %v3061_v3  ;;  %2371 = vmatprep.mubr.msk.f32.mxu1 %vm2970_vm0, %v2969_v0 }
 0x3b4   :  { %2341 = vmatprep.subr.mxu1 %v2969_v0 }
 0x3b5   :  { %2342 = vmatpush3.msra.mxu1 %v3064_v4 }
 0x3b6   :  { %2343 = vmatprep.subr.mxu1 %v2969_v0 }
 0x3b7   :  { %2344 = vmatpush3.msra.mxu1 %v3067_v6 }
 0x3b8   :  { %2345 = vmatprep.subr.mxu1 %v2969_v0 }
 0x3b9   :  { %2346 = vmatpush3.msra.mxu1 %v3071_v8 }
 0x3ba   :  { %2347 = vmatprep.subr.mxu1 %v2969_v0 }
 0x3bb   :  { %2348 = vmatpush3.msra.mxu1 %v3075_v10 }
 0x3bc   :  { %2349 = vmatprep.subr.mxu1 %v2969_v0 }
 0x3bd   :  { %2350 = vmatpush3.msra.mxu1 %v3079_v12 }
 0x3be   :  { %2351 = vmatprep.subr.mxu1 %v2969_v0 }
 0x3bf   :  { %2352 = vmatpush3.msra.mxu1 %v3083_v14 }
 0x3c0   :  { %2353 = vmatprep.subr.mxu1 %v2969_v0 }
 0x3c1   :  { %2354 = vmatpush3.msra.mxu1 %v3087_v16 }
 0x3c2   :  { %2355 = vmatprep.subr.mxu1 %v2969_v0 }
 0x3c3   :  { %2356 = vmatpush3.msra.mxu1 %v3091_v18 }
 0x3c4   :  { %2357 = vmatprep.subr.mxu1 %v2969_v0 }
 0x3c5   :  { %2358 = vmatpush3.msra.mxu1 %v3095_v20 }
 0x3c6   :  { %2359 = vmatprep.subr.mxu1 %v2969_v0 }
 0x3c7   :  { %2360 = vmatpush3.msra.mxu1 %v3099_v22 }
 0x3c8   :  { %2361 = vmatprep.subr.mxu1 %v2969_v0 }
 0x3c9   :  { %2362 = vmatpush3.msra.mxu1 %v3103_v24 }
 0x3ca   :  { %2363 = vmatprep.subr.mxu1 %v2969_v0 }
 0x3cb   :  { %2364 = vmatpush3.msra.mxu1 %v3107_v26 }
 0x3cc   :  { %2365 = vmatprep.subr.mxu1 %v2969_v0 }
 0x3cd   :  { %2366 = vmatpush3.msra.mxu1 %v3111_v28 }
 0x3ce   :  { %2367 = vmatprep.subr.mxu1 %v2969_v0 }
 0x3cf   :  { %2368 = vmatpush3.msra.mxu1 %v3116_v31 }
 0x3d0   :  { %2369 = vmatprep.subr.mxu1 %v2969_v0 }
 0x3d1   :  { %2370 = vmatpush3.msra.mxu1 %v3119_v33 }
 0x472   :  { %v649_v15 = vpop.f32.mrf.mxu1 }
 0x473   :  { %v653_v17 = vadd.f32 %v649_v15, %v255_v13 }
 0x474   :  { %v2303_v19 = vpop.f32.mrf.mxu1 }
 0x475   :  { %2787 = vtanh.f32 %v653_v17 }
 0x482   :  { %v3364_v21 = vpop.eup %2787 }
 0x483   :  { %2337 = vmatmul.mubr.f32.vlgmr.msra.gmra.mxu0 %v3364_v21 }
 0x484   :  { %2375 = vmatpush3.msra.mxu0 %v3061_v3  ;;  %2406 = vmatprep.mubr.msk.f32.mxu0 %vm2970_vm0, %v2969_v0  ;;  %v897_v3 = vld [vmem:[#allocation10 + $0x78] sm:$0xff] }
 0x485   :  { %2376 = vmatprep.subr.mxu0 %v2969_v0  ;;  %2409 = vmatprep.subr.mxu1 %v897_v3 }
 0x486   :  { %2377 = vmatpush3.msra.mxu0 %v3064_v4  ;;  %v260_v4 = vadd.f32 %v3240_v51, %v3198_v43 }
 0x487   :  { %2378 = vmatprep.subr.mxu0 %v2969_v0 }
 0x488   :  { %2379 = vmatpush3.msra.mxu0 %v3067_v6 }
 0x489   :  { %2380 = vmatprep.subr.mxu0 %v2969_v0 }
 0x48a   :  { %2381 = vmatpush3.msra.mxu0 %v3071_v8 }
 0x48b   :  { %2382 = vmatprep.subr.mxu0 %v2969_v0 }
 0x48c   :  { %2383 = vmatpush3.msra.mxu0 %v3075_v10 }
 0x48d   :  { %2384 = vmatprep.subr.mxu0 %v2969_v0 }
 0x48e   :  { %2385 = vmatpush3.msra.mxu0 %v3079_v12 }
 0x48f   :  { %2386 = vmatprep.subr.mxu0 %v2969_v0 }
 0x490   :  { %2387 = vmatpush3.msra.mxu0 %v3083_v14  ;;  %v896_v14 = vld [vmem:[#allocation10 + $0x70] sm:$0xff] }
 0x491   :  { %2388 = vmatprep.subr.mxu0 %v2969_v0 }
 0x492   :  { %2389 = vmatpush3.msra.mxu0 %v3087_v16  ;;  %v895_v16 = vld [vmem:[#allocation10 + $0x68] sm:$0xff] }
 0x493   :  { %2390 = vmatprep.subr.mxu0 %v2969_v0 }
 0x494   :  { %2391 = vmatpush3.msra.mxu0 %v3091_v18  ;;  %v894_v18 = vld [vmem:[#allocation10 + $0x60] sm:$0xff] }
 0x495   :  { %2392 = vmatprep.subr.mxu0 %v2969_v0 }
 0x496   :  { %2393 = vmatpush3.msra.mxu0 %v3095_v20  ;;  %v893_v20 = vld [vmem:[#allocation10 + $0x58] sm:$0xff] }
 0x497   :  { %2394 = vmatprep.subr.mxu0 %v2969_v0 }
 0x498   :  { %2395 = vmatpush3.msra.mxu0 %v3099_v22  ;;  %v892_v22 = vld [vmem:[#allocation10 + $0x50] sm:$0xff] }
 0x499   :  { %2396 = vmatprep.subr.mxu0 %v2969_v0 }
 0x49a   :  { %2397 = vmatpush3.msra.mxu0 %v3103_v24  ;;  %v890_v24 = vld [vmem:[#allocation10 + $0x40] sm:$0xff] }
 0x49b   :  { %2398 = vmatprep.subr.mxu0 %v2969_v0 }
 0x49c   :  { %2399 = vmatpush3.msra.mxu0 %v3107_v26  ;;  %v888_v26 = vld [vmem:[#allocation10 + $0x30] sm:$0xff] }
 0x49d   :  { %2400 = vmatprep.subr.mxu0 %v2969_v0 }
 0x49e   :  { %2401 = vmatpush3.msra.mxu0 %v3111_v28  ;;  %v886_v28 = vld [vmem:[#allocation10 + $0x20] sm:$0xff] }
 0x49f   :  { %2402 = vmatprep.subr.mxu0 %v2969_v0 }
 0x4a0   :  { %2403 = vmatpush3.msra.mxu0 %v3116_v31  ;;  %v883_v31 = vld [vmem:[#allocation10 + $0x8] sm:$0xff] }
 0x4a1   :  { %2404 = vmatprep.subr.mxu0 %v2969_v0 }
 0x4a2   :  { %2405 = vmatpush3.msra.mxu0 %v3119_v33  ;;  %v3409_v33 = vld [vmem:[#allocation12 + $0x78] sm:$0xff] }
 0x4a3   :  { %2453 = vmatprep.subr.mxu0 %v2969_v0 }
 0x543   :  { %v724_v6 = vpop.f32.mrf.mxu0 }
 0x544   :  { %v728_v8 = vadd.f32 %v724_v6, %v260_v4 }
 0x545   :  { %v2338_v10 = vpop.f32.mrf.mxu0 }
 0x546   :  { %2789 = vtanh.f32 %v728_v8 }
 0x553   :  { %v2790_v12 = vpop.eup %2789 }
 0x554   :  { %2372 = vmatmul.mubr.f32.vlgmr.msra.gmra.mxu1 %v2790_v12 }
 0x555   :  { %2410 = vmatpush3.msra.mxu1 %v897_v3  ;;  %2441 = vmatprep.mubr.f32.mxu1 %v3201_v48  ;;  %v3464_v48 = vld [vmem:[#allocation12 + $0x8] sm:$0xff] }
 0x556   :  { %2411 = vmatprep.subr.mxu1 %v896_v14 }
 0x557   :  { %2412 = vmatpush3.msra.mxu1 %v896_v14 }
 0x558   :  { %2413 = vmatprep.subr.mxu1 %v895_v16 }
 0x559   :  { %2414 = vmatpush3.msra.mxu1 %v895_v16 }
 0x55a   :  { %2415 = vmatprep.subr.mxu1 %v894_v18 }
 0x55b   :  { %2416 = vmatpush3.msra.mxu1 %v894_v18 }
 0x55c   :  { %2417 = vmatprep.subr.mxu1 %v893_v20 }
 0x55d   :  { %2418 = vmatpush3.msra.mxu1 %v893_v20 }
 0x55e   :  { %2419 = vmatprep.subr.mxu1 %v892_v22 }
 0x55f   :  { %2420 = vmatpush3.msra.mxu1 %v892_v22 }
 0x560   :  { %2421 = vmatprep.subr.mxu1 %v891_v23 }
 0x561   :  { %2422 = vmatpush3.msra.mxu1 %v891_v23 }
 0x562   :  { %2423 = vmatprep.subr.mxu1 %v890_v24 }
 0x563   :  { %2424 = vmatpush3.msra.mxu1 %v890_v24 }
 0x564   :  { %2425 = vmatprep.subr.mxu1 %v889_v25 }
 0x565   :  { %2426 = vmatpush3.msra.mxu1 %v889_v25 }
 0x566   :  { %2427 = vmatprep.subr.mxu1 %v888_v26 }
 0x567   :  { %2428 = vmatpush3.msra.mxu1 %v888_v26 }
 0x568   :  { %2429 = vmatprep.subr.mxu1 %v887_v27 }
 0x569   :  { %2430 = vmatpush3.msra.mxu1 %v887_v27 }
 0x56a   :  { %2431 = vmatprep.subr.mxu1 %v886_v28 }
 0x56b   :  { %2432 = vmatpush3.msra.mxu1 %v886_v28 }
 0x56c   :  { %2433 = vmatprep.subr.mxu1 %v885_v29 }
 0x56d   :  { %2434 = vmatpush3.msra.mxu1 %v885_v29 }
 0x56e   :  { %2435 = vmatprep.subr.mxu1 %v884_v30 }
 0x56f   :  { %2436 = vmatpush3.msra.mxu1 %v884_v30 }
 0x570   :  { %2437 = vmatprep.subr.mxu1 %v883_v31 }
 0x571   :  { %2438 = vmatpush3.msra.mxu1 %v883_v31 }
 0x572   :  { %2439 = vmatprep.subr.mxu1 %v882_v32 }
 0x573   :  { %2440 = vmatpush3.msra.mxu1 %v882_v32 }
 0x574   :  { %2442 = vmatmul.mubr.f32.vlgmr.msra.gmra.mxu1 %v3249_v59  ;;  %2488 = vmatprep.subr.mxu1 %v2969_v0 }
 0x575   :  { %2444 = vmatprep.mubr.f32.mxu1 %v3287_v1  ;;  %2489 = vmatpush3.msra.mxu1 %v3409_v33 }
 0x576   :  { %2490 = vmatprep.subr.mxu1 %v2969_v0 }
 0x577   :  { %2491 = vmatpush3.msra.mxu1 %v3412_v34 }
 0x578   :  { %2445 = vmatmul.mubr.f32.gmra.mxu1 %v3326_v11  ;;  %2492 = vmatprep.subr.mxu1 %v2969_v0 }
 0x579   :  { %2447 = vmatprep.mubr.f32.mxu1 %v3364_v21  ;;  %2493 = vmatpush3.msra.mxu1 %v3416_v35 }
 0x57a   :  { %2494 = vmatprep.subr.mxu1 %v2969_v0 }
 0x57b   :  { %2495 = vmatpush3.msra.mxu1 %v3420_v36 }
 0x57c   :  { %2448 = vmatmul.mubr.f32.gmra.mxu1 %v2790_v12  ;;  %2496 = vmatprep.subr.mxu1 %v2969_v0 }
 0x57d   :  { %2497 = vmatpush3.msra.mxu1 %v3424_v37 }
 0x57e   :  { %2498 = vmatprep.subr.mxu1 %v2969_v0 }
 0x57f   :  { %2499 = vmatpush3.msra.mxu1 %v3428_v38 }
 0x580   :  { %2500 = vmatprep.subr.mxu1 %v2969_v0 }
 0x581   :  { %2501 = vmatpush3.msra.mxu1 %v3432_v39 }
 0x582   :  { %2502 = vmatprep.subr.mxu1 %v2969_v0 }
 0x583   :  { %2503 = vmatpush3.msra.mxu1 %v3436_v40 }
 0x584   :  { %2504 = vmatprep.subr.mxu1 %v2969_v0 }
 0x585   :  { %2505 = vmatpush3.msra.mxu1 %v3440_v41 }
 0x586   :  { %2506 = vmatprep.subr.mxu1 %v2969_v0 }
 0x587   :  { %2507 = vmatpush3.msra.mxu1 %v3444_v42 }
 0x588   :  { %2508 = vmatprep.subr.mxu1 %v2969_v0 }
 0x589   :  { %2509 = vmatpush3.msra.mxu1 %v3448_v44 }
 0x58a   :  { %2510 = vmatprep.subr.mxu1 %v2969_v0 }
 0x58b   :  { %2511 = vmatpush3.msra.mxu1 %v3452_v45 }
 0x58c   :  { %2512 = vmatprep.subr.mxu1 %v2969_v0 }
 0x58d   :  { %2513 = vmatpush3.msra.mxu1 %v3456_v46 }
 0x58e   :  { %2514 = vmatprep.subr.mxu1 %v2969_v0 }
 0x58f   :  { %2515 = vmatpush3.msra.mxu1 %v3460_v47 }
 0x590   :  { %2516 = vmatprep.subr.mxu1 %v2969_v0 }
 0x591   :  { %2517 = vmatpush3.msra.mxu1 %v3464_v48 }
 0x592   :  { %2518 = vmatprep.subr.mxu1 %v2969_v0 }
 0x593   :  { %2519 = vmatpush3.msra.mxu1 %v3468_v49 }
 0x594   :  { %2558 = vmatprep.subr.mxu1 %v2969_v0 }
 0x614   :  { %v799_v51 = vpop.f32.mrf.mxu1 }
 0x615   :  { %v803_v52 = vadd.f32 %v799_v51, %v265_v50  ;;  %v1637_v50 = vld [vmem:[#allocation13 + $0x30] sm:$0xff]  ;;  %v1636_v51 = vld [vmem:[#allocation13 + $0x28] sm:$0xff] }
 0x616   :  { %v2373_v55 = vpop.f32.mrf.mxu1 }
 0x617   :  { %2791 = vtanh.f32 %v803_v52  ;;  %v1635_v52 = vld [vmem:[#allocation13 + $0x20] sm:$0xff]  ;;  %v1634_v55 = vld [vmem:[#allocation13 + $0x18] sm:$0xff] }
 0x624   :  { %v2792_v56 = vpop.eup %2791 }
 0x625   :  { %2407 = vmatmul.mubr.f32.vlgmr.msra.gmra.mxu0 %v2792_v56  ;;  %2450 = vmatprep.mubr.f32.mxu1 %v2792_v56  ;;  %v1633_v56 = vld [vmem:[#allocation13 + $0x10] sm:$0xff] }
 0x626   :  { %2454 = vmatpush3.msra.mxu0 %v3409_v33  ;;  %2485 = vmatprep.mubr.msk.f32.mxu0 %vm2970_vm0, %v2969_v0 }
 0x627   :  { %2455 = vmatprep.subr.mxu0 %v2969_v0 }
 0x628   :  { %2456 = vmatpush3.msra.mxu0 %v3412_v34 }
 0x629   :  { %2457 = vmatprep.subr.mxu0 %v2969_v0 }
 0x62a   :  { %2458 = vmatpush3.msra.mxu0 %v3416_v35 }
 0x62b   :  { %2459 = vmatprep.subr.mxu0 %v2969_v0 }
 0x62c   :  { %2460 = vmatpush3.msra.mxu0 %v3420_v36 }
 0x62d   :  { %2461 = vmatprep.subr.mxu0 %v2969_v0 }
 0x62e   :  { %2462 = vmatpush3.msra.mxu0 %v3424_v37 }
 0x62f   :  { %2463 = vmatprep.subr.mxu0 %v2969_v0 }
 0x630   :  { %2464 = vmatpush3.msra.mxu0 %v3428_v38 }
 0x631   :  { %2465 = vmatprep.subr.mxu0 %v2969_v0 }
 0x632   :  { %2466 = vmatpush3.msra.mxu0 %v3432_v39 }
 0x633   :  { %2467 = vmatprep.subr.mxu0 %v2969_v0 }
 0x634   :  { %2468 = vmatpush3.msra.mxu0 %v3436_v40  ;;  %v2443_v61 = vpop.f32.mrf.mxu1 }
 0x635   :  { %2469 = vmatprep.subr.mxu0 %v2969_v0  ;;  %v1001_v19 = vadd.f32 %v2443_v61, %v3551_v63 }
 0x636   :  { %2470 = vmatpush3.msra.mxu0 %v3440_v41  ;;  %v995_v62 = vpop.f32.mrf.mxu1 }
 0x637   :  { %2471 = vmatprep.subr.mxu0 %v2969_v0  ;;  %v996_v1 = vadd.f32 %v3551_v63, %v995_v62 }
 0x638   :  { %2472 = vmatpush3.msra.mxu0 %v3444_v42  ;;  %v3588_v7 = vpop.f32.mrf.mxu1 }
 0x639   :  { %2473 = vmatprep.subr.mxu0 %v2969_v0  ;;  %v1011_v18 = vadd.f32 %v3588_v7, %v3551_v63 }
 0x63a   :  { %2474 = vmatpush3.msra.mxu0 %v3448_v44  ;;  %v1005_v9 = vpop.f32.mrf.mxu1 }
 0x63b   :  { %2475 = vmatprep.subr.mxu0 %v2969_v0  ;;  %v1006_v8 = vadd.f32 %v3551_v63, %v1005_v9 }
 0x63c   :  { %2476 = vmatpush3.msra.mxu0 %v3452_v45  ;;  %v3590_v11 = vpop.f32.mrf.mxu1 }
 0x63d   :  { %2477 = vmatprep.subr.mxu0 %v2969_v0  ;;  %v1021_v30 = vadd.f32 %v3590_v11, %v3551_v63 }
 0x63e   :  { %2478 = vmatpush3.msra.mxu0 %v3456_v46  ;;  %v3592_v13 = vpop.f32.mrf.mxu1 }
 0x63f   :  { %2479 = vmatprep.subr.mxu0 %v2969_v0  ;;  %v1016_v25 = vadd.f32 %v3551_v63, %v3592_v13 }
 0x640   :  { %2480 = vmatpush3.msra.mxu0 %v3460_v47 }
 0x641   :  { %2481 = vmatprep.subr.mxu0 %v2969_v0 }
 0x642   :  { %2482 = vmatpush3.msra.mxu0 %v3464_v48 }
 0x643   :  { %2483 = vmatprep.subr.mxu0 %v2969_v0 }
 0x644   :  { %2484 = vmatpush3.msra.mxu0 %v3468_v49 }
 0x645   :  { %2486 = vmatmul.mubr.f32.vlgmr.msra.gmra.mxu0 %v2969_v0  ;;  %2523 = vmatprep.subr.mxu0 %v2969_v0 }
 0x646   :  { %2524 = vmatpush3.msra.mxu0 %v3409_v33  ;;  %2555 = vmatprep.mubr.msk.f32.mxu0 %vm2970_vm0, %v2969_v0 }
 0x647   :  { %2525 = vmatprep.subr.mxu0 %v2969_v0 }
 0x648   :  { %2526 = vmatpush3.msra.mxu0 %v3412_v34 }
 0x649   :  { %2527 = vmatprep.subr.mxu0 %v2969_v0 }
 0x64a   :  { %2528 = vmatpush3.msra.mxu0 %v3416_v35 }
 0x64b   :  { %2529 = vmatprep.subr.mxu0 %v2969_v0 }
 0x64c   :  { %2530 = vmatpush3.msra.mxu0 %v3420_v36 }
 0x64d   :  { %2531 = vmatprep.subr.mxu0 %v2969_v0 }
 0x64e   :  { %2532 = vmatpush3.msra.mxu0 %v3424_v37 }
 0x64f   :  { %2533 = vmatprep.subr.mxu0 %v2969_v0 }
 0x650   :  { %2534 = vmatpush3.msra.mxu0 %v3428_v38 }
 0x651   :  { %2535 = vmatprep.subr.mxu0 %v2969_v0 }
 0x652   :  { %2536 = vmatpush3.msra.mxu0 %v3432_v39 }
 0x653   :  { %2537 = vmatprep.subr.mxu0 %v2969_v0 }
 0x654   :  { %2538 = vmatpush3.msra.mxu0 %v3436_v40 }
 0x655   :  { %2539 = vmatprep.subr.mxu0 %v2969_v0 }
 0x656   :  { %2540 = vmatpush3.msra.mxu0 %v3440_v41 }
 0x657   :  { %2541 = vmatprep.subr.mxu0 %v2969_v0 }
 0x658   :  { %2542 = vmatpush3.msra.mxu0 %v3444_v42 }
 0x659   :  { %2543 = vmatprep.subr.mxu0 %v2969_v0 }
 0x65a   :  { %2544 = vmatpush3.msra.mxu0 %v3448_v44 }
 0x65b   :  { %2545 = vmatprep.subr.mxu0 %v2969_v0 }
 0x65c   :  { %2546 = vmatpush3.msra.mxu0 %v3452_v45 }
 0x65d   :  { %2547 = vmatprep.subr.mxu0 %v2969_v0 }
 0x65e   :  { %2548 = vmatpush3.msra.mxu0 %v3456_v46 }
 0x65f   :  { %2549 = vmatprep.subr.mxu0 %v2969_v0 }
 0x660   :  { %2550 = vmatpush3.msra.mxu0 %v3460_v47 }
 0x661   :  { %2551 = vmatprep.subr.mxu0 %v2969_v0 }
 0x662   :  { %2552 = vmatpush3.msra.mxu0 %v3464_v48 }
 0x663   :  { %2553 = vmatprep.subr.mxu0 %v2969_v0 }
 0x664   :  { %2554 = vmatpush3.msra.mxu0 %v3468_v49 }
 0x665   :  { %2593 = vmatprep.subr.mxu0 %v2969_v0 }
 0x6e5   :  { %v874_v57 = vpop.f32.mrf.mxu0 }
 0x6e6   :  { %v878_v58 = vadd.f32 %v874_v57, %v270_v54  ;;  %v1632_v54 = vld [vmem:[#allocation13 + $0x8] sm:$0xff]  ;;  %v1631_v57 = vld [vmem:[#allocation13] sm:$0xff] }
 0x6e7   :  { %v2408_v59 = vpop.f32.mrf.mxu0 }
 0x6e8   :  { %2793 = vtanh.f32 %v878_v58 }
 0x6f5   :  { %v2794_v60 = vpop.eup %2793 }
 0x6f6   :  { %2451 = vmatmul.mubr.f32.gmra.mxu1 %v2794_v60 }
 0x6f7   :  { %2520 = vmatprep.mubr.msk.f32.mxu1 %vm2970_vm0, %v2969_v0 }
 0x705   :  { %v1111_v2 = vpop.f32.mrf.mxu0 }
 0x706   :  { %v1115_v43 = vadd.f32 %v1111_v2, %v996_v1  ;;  %v1747_v1 = vld [vmem:[%s3776_s8] ss:$0 sm:$0xff] }
 0x707   :  { %v2487_v53 = vpop.f32.mrf.mxu0 }
 0x708   :  { %2795 = vtanh.f32 %v1115_v43 }
 0x715   :  { %v2796_v5 = vpop.eup %2795 }
 0x716   :  { %2521 = vmatmul.mubr.f32.vlgmr.msra.gmra.mxu1 %v2796_v5 }
 0x717   :  { %2559 = vmatpush3.msra.mxu1 %v3409_v33  ;;  %2590 = vmatprep.mubr.msk.f32.mxu1 %vm2970_vm0, %v2969_v0 }
 0x718   :  { %2560 = vmatprep.subr.mxu1 %v2969_v0 }
 0x719   :  { %2561 = vmatpush3.msra.mxu1 %v3412_v34 }
 0x71a   :  { %2562 = vmatprep.subr.mxu1 %v2969_v0 }
 0x71b   :  { %2563 = vmatpush3.msra.mxu1 %v3416_v35 }
 0x71c   :  { %2564 = vmatprep.subr.mxu1 %v2969_v0 }
 0x71d   :  { %2565 = vmatpush3.msra.mxu1 %v3420_v36 }
 0x71e   :  { %2566 = vmatprep.subr.mxu1 %v2969_v0 }
 0x71f   :  { %2567 = vmatpush3.msra.mxu1 %v3424_v37 }
 0x720   :  { %2568 = vmatprep.subr.mxu1 %v2969_v0 }
 0x721   :  { %2569 = vmatpush3.msra.mxu1 %v3428_v38 }
 0x722   :  { %2570 = vmatprep.subr.mxu1 %v2969_v0 }
 0x723   :  { %2571 = vmatpush3.msra.mxu1 %v3432_v39 }
 0x724   :  { %2572 = vmatprep.subr.mxu1 %v2969_v0 }
 0x725   :  { %2573 = vmatpush3.msra.mxu1 %v3436_v40 }
 0x726   :  { %2574 = vmatprep.subr.mxu1 %v2969_v0 }
 0x727   :  { %2575 = vmatpush3.msra.mxu1 %v3440_v41 }
 0x728   :  { %2576 = vmatprep.subr.mxu1 %v2969_v0 }
 0x729   :  { %2577 = vmatpush3.msra.mxu1 %v3444_v42 }
 0x72a   :  { %2578 = vmatprep.subr.mxu1 %v2969_v0 }
 0x72b   :  { %2579 = vmatpush3.msra.mxu1 %v3448_v44 }
 0x72c   :  { %2580 = vmatprep.subr.mxu1 %v2969_v0 }
 0x72d   :  { %2581 = vmatpush3.msra.mxu1 %v3452_v45 }
 0x72e   :  { %2582 = vmatprep.subr.mxu1 %v2969_v0 }
 0x72f   :  { %2583 = vmatpush3.msra.mxu1 %v3456_v46 }
 0x730   :  { %2584 = vmatprep.subr.mxu1 %v2969_v0 }
 0x731   :  { %2585 = vmatpush3.msra.mxu1 %v3460_v47 }
 0x732   :  { %2586 = vmatprep.subr.mxu1 %v2969_v0 }
 0x733   :  { %2587 = vmatpush3.msra.mxu1 %v3464_v48 }
 0x734   :  { %2588 = vmatprep.subr.mxu1 %v2969_v0 }
 0x735   :  { %2589 = vmatpush3.msra.mxu1 %v3468_v49 }
 0x736   :  { %2628 = vmatprep.subr.mxu1 %v2969_v0 }
 0x7b6   :  { %v3594_v15 = vpop.f32.mrf.mxu1 }
 0x7b7   :  { %v1031_v58 = vadd.f32 %v3594_v15, %v3551_v63 }
 0x7b8   :  { %v3596_v17 = vpop.f32.mrf.mxu1 }
 0x7d6   :  { %v1184_v21 = vpop.f32.mrf.mxu1 }
 0x7d7   :  { %v1188_v3 = vadd.f32 %v1184_v21, %v1001_v19 }
 0x7d8   :  { %v2522_v4 = vpop.f32.mrf.mxu1 }
 0x7d9   :  { %2797 = vtanh.f32 %v1188_v3 }
 0x7e6   :  { %v2798_v6 = vpop.eup %2797 }
 0x7e7   :  { %2556 = vmatmul.mubr.f32.vlgmr.msra.gmra.mxu0 %v2798_v6 }
 0x7e8   :  { %2594 = vmatpush3.msra.mxu0 %v3409_v33  ;;  %2625 = vmatprep.mubr.msk.f32.mxu0 %vm2970_vm0, %v2969_v0 }
 0x7e9   :  { %2595 = vmatprep.subr.mxu0 %v2969_v0 }
 0x7ea   :  { %2596 = vmatpush3.msra.mxu0 %v3412_v34 }
 0x7eb   :  { %2597 = vmatprep.subr.mxu0 %v2969_v0 }
 0x7ec   :  { %2598 = vmatpush3.msra.mxu0 %v3416_v35 }
 0x7ed   :  { %2599 = vmatprep.subr.mxu0 %v2969_v0 }
 0x7ee   :  { %2600 = vmatpush3.msra.mxu0 %v3420_v36 }
 0x7ef   :  { %2601 = vmatprep.subr.mxu0 %v2969_v0 }
 0x7f0   :  { %2602 = vmatpush3.msra.mxu0 %v3424_v37 }
 0x7f1   :  { %2603 = vmatprep.subr.mxu0 %v2969_v0 }
 0x7f2   :  { %2604 = vmatpush3.msra.mxu0 %v3428_v38 }
 0x7f3   :  { %2605 = vmatprep.subr.mxu0 %v2969_v0 }
 0x7f4   :  { %2606 = vmatpush3.msra.mxu0 %v3432_v39 }
 0x7f5   :  { %2607 = vmatprep.subr.mxu0 %v2969_v0 }
 0x7f6   :  { %2608 = vmatpush3.msra.mxu0 %v3436_v40 }
 0x7f7   :  { %2609 = vmatprep.subr.mxu0 %v2969_v0 }
 0x7f8   :  { %2610 = vmatpush3.msra.mxu0 %v3440_v41 }
 0x7f9   :  { %2611 = vmatprep.subr.mxu0 %v2969_v0 }
 0x7fa   :  { %2612 = vmatpush3.msra.mxu0 %v3444_v42 }
 0x7fb   :  { %2613 = vmatprep.subr.mxu0 %v2969_v0 }
 0x7fc   :  { %2614 = vmatpush3.msra.mxu0 %v3448_v44 }
 0x7fd   :  { %2615 = vmatprep.subr.mxu0 %v2969_v0 }
 0x7fe   :  { %2616 = vmatpush3.msra.mxu0 %v3452_v45 }
 0x7ff   :  { %2617 = vmatprep.subr.mxu0 %v2969_v0 }
 0x800   :  { %2618 = vmatpush3.msra.mxu0 %v3456_v46 }
 0x801   :  { %2619 = vmatprep.subr.mxu0 %v2969_v0 }
 0x802   :  { %2620 = vmatpush3.msra.mxu0 %v3460_v47 }
 0x803   :  { %2621 = vmatprep.subr.mxu0 %v2969_v0 }
 0x804   :  { %2622 = vmatpush3.msra.mxu0 %v3464_v48 }
 0x805   :  { %2623 = vmatprep.subr.mxu0 %v2969_v0 }
 0x806   :  { %2624 = vmatpush3.msra.mxu0 %v3468_v49 }
 0x807   :  { %2663 = vmatprep.subr.mxu0 %v2969_v0 }
 0x8a7   :  { %v1257_v10 = vpop.f32.mrf.mxu0 }
 0x8a8   :  { %v1261_v12 = vadd.f32 %v1257_v10, %v1006_v8 }
 0x8a9   :  { %v2557_v14 = vpop.f32.mrf.mxu0 }
 0x8aa   :  { %2799 = vtanh.f32 %v1261_v12 }
 0x8b7   :  { %v2800_v16 = vpop.eup %2799 }
 0x8b8   :  { %2591 = vmatmul.mubr.f32.vlgmr.msra.gmra.mxu1 %v2800_v16 }
 0x8b9   :  { %2629 = vmatpush3.msra.mxu1 %v3409_v33  ;;  %2660 = vmatprep.mubr.msk.f32.mxu1 %vm2970_vm0, %v2969_v0 }
 0x8ba   :  { %2630 = vmatprep.subr.mxu1 %v2969_v0 }
 0x8bb   :  { %2631 = vmatpush3.msra.mxu1 %v3412_v34 }
 0x8bc   :  { %2632 = vmatprep.subr.mxu1 %v2969_v0 }
 0x8bd   :  { %2633 = vmatpush3.msra.mxu1 %v3416_v35 }
 0x8be   :  { %2634 = vmatprep.subr.mxu1 %v2969_v0 }
 0x8bf   :  { %2635 = vmatpush3.msra.mxu1 %v3420_v36 }
 0x8c0   :  { %2636 = vmatprep.subr.mxu1 %v2969_v0 }
 0x8c1   :  { %2637 = vmatpush3.msra.mxu1 %v3424_v37 }
 0x8c2   :  { %2638 = vmatprep.subr.mxu1 %v2969_v0 }
 0x8c3   :  { %2639 = vmatpush3.msra.mxu1 %v3428_v38 }
 0x8c4   :  { %2640 = vmatprep.subr.mxu1 %v2969_v0 }
 0x8c5   :  { %2641 = vmatpush3.msra.mxu1 %v3432_v39 }
 0x8c6   :  { %2642 = vmatprep.subr.mxu1 %v2969_v0 }
 0x8c7   :  { %2643 = vmatpush3.msra.mxu1 %v3436_v40 }
 0x8c8   :  { %2644 = vmatprep.subr.mxu1 %v2969_v0 }
 0x8c9   :  { %2645 = vmatpush3.msra.mxu1 %v3440_v41 }
 0x8ca   :  { %2646 = vmatprep.subr.mxu1 %v2969_v0 }
 0x8cb   :  { %2647 = vmatpush3.msra.mxu1 %v3444_v42 }
 0x8cc   :  { %2648 = vmatprep.subr.mxu1 %v2969_v0 }
 0x8cd   :  { %2649 = vmatpush3.msra.mxu1 %v3448_v44 }
 0x8ce   :  { %2650 = vmatprep.subr.mxu1 %v2969_v0 }
 0x8cf   :  { %2651 = vmatpush3.msra.mxu1 %v3452_v45 }
 0x8d0   :  { %2652 = vmatprep.subr.mxu1 %v2969_v0 }
 0x8d1   :  { %2653 = vmatpush3.msra.mxu1 %v3456_v46 }
 0x8d2   :  { %2654 = vmatprep.subr.mxu1 %v2969_v0 }
 0x8d3   :  { %2655 = vmatpush3.msra.mxu1 %v3460_v47 }
 0x8d4   :  { %2656 = vmatprep.subr.mxu1 %v2969_v0 }
 0x8d5   :  { %2657 = vmatpush3.msra.mxu1 %v3464_v48 }
 0x8d6   :  { %2658 = vmatprep.subr.mxu1 %v2969_v0 }
 0x8d7   :  { %2659 = vmatpush3.msra.mxu1 %v3468_v49 }
 0x8d8   :  { %2698 = vmatprep.subr.mxu1 %v2969_v0 }
 0x978   :  { %v1330_v20 = vpop.f32.mrf.mxu1 }
 0x979   :  { %v1334_v22 = vadd.f32 %v1330_v20, %v1011_v18 }
 0x97a   :  { %v2592_v23 = vpop.f32.mrf.mxu1 }
 0x97b   :  { %2801 = vtanh.f32 %v1334_v22 }
 0x988   :  { %v2802_v24 = vpop.eup %2801 }
 0x989   :  { %2626 = vmatmul.mubr.f32.vlgmr.msra.gmra.mxu0 %v2802_v24 }
 0x98a   :  { %2664 = vmatpush3.msra.mxu0 %v3409_v33  ;;  %2695 = vmatprep.mubr.msk.f32.mxu0 %vm2970_vm0, %v2969_v0 }
 0x98b   :  { %2665 = vmatprep.subr.mxu0 %v2969_v0 }
 0x98c   :  { %2666 = vmatpush3.msra.mxu0 %v3412_v34 }
 0x98d   :  { %2667 = vmatprep.subr.mxu0 %v2969_v0 }
 0x98e   :  { %2668 = vmatpush3.msra.mxu0 %v3416_v35 }
 0x98f   :  { %2669 = vmatprep.subr.mxu0 %v2969_v0 }
 0x990   :  { %2670 = vmatpush3.msra.mxu0 %v3420_v36 }
 0x991   :  { %2671 = vmatprep.subr.mxu0 %v2969_v0 }
 0x992   :  { %2672 = vmatpush3.msra.mxu0 %v3424_v37 }
 0x993   :  { %2673 = vmatprep.subr.mxu0 %v2969_v0 }
 0x994   :  { %2674 = vmatpush3.msra.mxu0 %v3428_v38 }
 0x995   :  { %2675 = vmatprep.subr.mxu0 %v2969_v0 }
 0x996   :  { %2676 = vmatpush3.msra.mxu0 %v3432_v39 }
 0x997   :  { %2677 = vmatprep.subr.mxu0 %v2969_v0 }
 0x998   :  { %2678 = vmatpush3.msra.mxu0 %v3436_v40 }
 0x999   :  { %2679 = vmatprep.subr.mxu0 %v2969_v0 }
 0x99a   :  { %2680 = vmatpush3.msra.mxu0 %v3440_v41 }
 0x99b   :  { %2681 = vmatprep.subr.mxu0 %v2969_v0 }
 0x99c   :  { %2682 = vmatpush3.msra.mxu0 %v3444_v42 }
 0x99d   :  { %2683 = vmatprep.subr.mxu0 %v2969_v0 }
 0x99e   :  { %2684 = vmatpush3.msra.mxu0 %v3448_v44 }
 0x99f   :  { %2685 = vmatprep.subr.mxu0 %v2969_v0 }
 0x9a0   :  { %2686 = vmatpush3.msra.mxu0 %v3452_v45 }
 0x9a1   :  { %2687 = vmatprep.subr.mxu0 %v2969_v0 }
 0x9a2   :  { %2688 = vmatpush3.msra.mxu0 %v3456_v46 }
 0x9a3   :  { %2689 = vmatprep.subr.mxu0 %v2969_v0 }
 0x9a4   :  { %2690 = vmatpush3.msra.mxu0 %v3460_v47 }
 0x9a5   :  { %2691 = vmatprep.subr.mxu0 %v2969_v0 }
 0x9a6   :  { %2692 = vmatpush3.msra.mxu0 %v3464_v48 }
 0x9a7   :  { %2693 = vmatprep.subr.mxu0 %v2969_v0 }
 0x9a8   :  { %2694 = vmatpush3.msra.mxu0 %v3468_v49 }
 0x9a9   :  { %2733 = vmatprep.subr.mxu0 %v2969_v0 }
 0xa49   :  { %v1403_v26 = vpop.f32.mrf.mxu0 }
 0xa4a   :  { %v1407_v27 = vadd.f32 %v1403_v26, %v1016_v25 }
 0xa4b   :  { %v2627_v28 = vpop.f32.mrf.mxu0 }
 0xa4c   :  { %2803 = vtanh.f32 %v1407_v27 }
 0xa59   :  { %v2804_v29 = vpop.eup %2803 }
 0xa5a   :  { %2661 = vmatmul.mubr.f32.vlgmr.msra.gmra.mxu1 %v2804_v29 }
 0xa5b   :  { %2699 = vmatpush3.msra.mxu1 %v3409_v33  ;;  %2730 = vmatprep.mubr.msk.f32.mxu1 %vm2970_vm0, %v2969_v0 }
 0xa5c   :  { %2700 = vmatprep.subr.mxu1 %v2969_v0 }
 0xa5d   :  { %2701 = vmatpush3.msra.mxu1 %v3412_v34 }
 0xa5e   :  { %2702 = vmatprep.subr.mxu1 %v2969_v0 }
 0xa5f   :  { %2703 = vmatpush3.msra.mxu1 %v3416_v35  ;;  %v1646_v35 = vld [vmem:[#allocation13 + $0x78] sm:$0xff] }
 0xa60   :  { %2704 = vmatprep.subr.mxu1 %v2969_v0 }
 0xa61   :  { %2705 = vmatpush3.msra.mxu1 %v3420_v36  ;;  %v1645_v36 = vld [vmem:[#allocation13 + $0x70] sm:$0xff] }
 0xa62   :  { %2706 = vmatprep.subr.mxu1 %v2969_v0 }
 0xa63   :  { %2707 = vmatpush3.msra.mxu1 %v3424_v37  ;;  %v1644_v37 = vld [vmem:[#allocation13 + $0x68] sm:$0xff] }
 0xa64   :  { %2708 = vmatprep.subr.mxu1 %v2969_v0 }
 0xa65   :  { %2709 = vmatpush3.msra.mxu1 %v3428_v38  ;;  %v1643_v38 = vld [vmem:[#allocation13 + $0x60] sm:$0xff] }
 0xa66   :  { %2710 = vmatprep.subr.mxu1 %v2969_v0 }
 0xa67   :  { %2711 = vmatpush3.msra.mxu1 %v3432_v39  ;;  %v1642_v39 = vld [vmem:[#allocation13 + $0x58] sm:$0xff] }
 0xa68   :  { %2712 = vmatprep.subr.mxu1 %v2969_v0 }
 0xa69   :  { %2713 = vmatpush3.msra.mxu1 %v3436_v40  ;;  %v1641_v40 = vld [vmem:[#allocation13 + $0x50] sm:$0xff] }
 0xa6a   :  { %2714 = vmatprep.subr.mxu1 %v2969_v0 }
 0xa6b   :  { %2715 = vmatpush3.msra.mxu1 %v3440_v41  ;;  %v1640_v41 = vld [vmem:[#allocation13 + $0x48] sm:$0xff] }
 0xa6c   :  { %2716 = vmatprep.subr.mxu1 %v2969_v0 }
 0xa6d   :  { %2717 = vmatpush3.msra.mxu1 %v3444_v42  ;;  %v1026_v42 = vadd.f32 %v3551_v63, %v3596_v17 }
 0xa6e   :  { %2718 = vmatprep.subr.mxu1 %v2969_v0 }
 0xa6f   :  { %2719 = vmatpush3.msra.mxu1 %v3448_v44 }
 0xa70   :  { %2720 = vmatprep.subr.mxu1 %v2969_v0 }
 0xa71   :  { %2721 = vmatpush3.msra.mxu1 %v3452_v45 }
 0xa72   :  { %2722 = vmatprep.subr.mxu1 %v2969_v0 }
 0xa73   :  { %2723 = vmatpush3.msra.mxu1 %v3456_v46 }
 0xa74   :  { %2724 = vmatprep.subr.mxu1 %v2969_v0 }
 0xa75   :  { %2725 = vmatpush3.msra.mxu1 %v3460_v47 }
 0xa76   :  { %2726 = vmatprep.subr.mxu1 %v2969_v0 }
 0xa77   :  { %2727 = vmatpush3.msra.mxu1 %v3464_v48  ;;  %v1639_v48 = vld [vmem:[#allocation13 + $0x40] sm:$0xff] }
 0xa78   :  { %2728 = vmatprep.subr.mxu1 %v2969_v0 }
 0xa79   :  { %2729 = vmatpush3.msra.mxu1 %v3468_v49  ;;  %v1638_v49 = vld [vmem:[#allocation13 + $0x38] sm:$0xff] }
 0xb1a   :  { %v1476_v31 = vpop.f32.mrf.mxu1 }
 0xb1b   :  { %v1480_v32 = vadd.f32 %v1476_v31, %v1021_v30 }
 0xb1c   :  { %v2662_v33 = vpop.f32.mrf.mxu1 }
 0xb1d   :  { %2805 = vtanh.f32 %v1480_v32 }
 0xb2a   :  { %v2806_v34 = vpop.eup %2805 }
 0xb2b   :  { %2696 = vmatmul.mubr.f32.vlgmr.msra.gmra.mxu0 %v2806_v34 }
 0xb2c   :  { %2765 = vmatprep.mubr.msk.f32.mxu0 %vm2970_vm0, %v2969_v0  ;;  %2734 = vmatpush3.msra.mxu0 %v1646_v35 }
 0xb2d   :  { %2735 = vmatprep.subr.mxu0 %v2969_v0 }
 0xb2e   :  { %2736 = vmatpush3.msra.mxu0 %v1645_v36 }
 0xb2f   :  { %2737 = vmatprep.subr.mxu0 %v2969_v0 }
 0xb30   :  { %2738 = vmatpush3.msra.mxu0 %v1644_v37 }
 0xb31   :  { %2739 = vmatprep.subr.mxu0 %v2969_v0 }
 0xb32   :  { %2740 = vmatpush3.msra.mxu0 %v1643_v38 }
 0xb33   :  { %2741 = vmatprep.subr.mxu0 %v2969_v0 }
 0xb34   :  { %2742 = vmatpush3.msra.mxu0 %v1642_v39 }
 0xb35   :  { %2743 = vmatprep.subr.mxu0 %v2969_v0 }
 0xb36   :  { %2744 = vmatpush3.msra.mxu0 %v1641_v40 }
 0xb37   :  { %2745 = vmatprep.subr.mxu0 %v2969_v0 }
 0xb38   :  { %2746 = vmatpush3.msra.mxu0 %v1640_v41 }
 0xb39   :  { %2747 = vmatprep.subr.mxu0 %v2969_v0 }
 0xb3a   :  { %2748 = vmatpush3.msra.mxu0 %v1639_v48 }
 0xb3b   :  { %2749 = vmatprep.subr.mxu0 %v2969_v0 }
 0xb3c   :  { %2750 = vmatpush3.msra.mxu0 %v1638_v49 }
 0xb3d   :  { %2751 = vmatprep.subr.mxu0 %v2969_v0 }
 0xb3e   :  { %2752 = vmatpush3.msra.mxu0 %v1637_v50 }
 0xb3f   :  { %2753 = vmatprep.subr.mxu0 %v2969_v0 }
 0xb40   :  { %2754 = vmatpush3.msra.mxu0 %v1636_v51 }
 0xb41   :  { %2755 = vmatprep.subr.mxu0 %v2969_v0 }
 0xb42   :  { %2756 = vmatpush3.msra.mxu0 %v1635_v52 }
 0xb43   :  { %2757 = vmatprep.subr.mxu0 %v2969_v0 }
 0xb44   :  { %2758 = vmatpush3.msra.mxu0 %v1634_v55 }
 0xb45   :  { %2759 = vmatprep.subr.mxu0 %v2969_v0 }
 0xb46   :  { %2760 = vmatpush3.msra.mxu0 %v1633_v56 }
 0xb47   :  { %2761 = vmatprep.subr.mxu0 %v2969_v0 }
 0xb48   :  { %2762 = vmatpush3.msra.mxu0 %v1632_v54 }
 0xb49   :  { %2763 = vmatprep.subr.mxu0 %v2969_v0 }
 0xb4a   :  { %2764 = vmatpush3.msra.mxu0 %v1631_v57 }
 0xbeb   :  { %v1549_v44 = vpop.f32.mrf.mxu0 }
 0xbec   :  { %v1553_v45 = vadd.f32 %v1549_v44, %v1026_v42 }
 0xbed   :  { %v2697_v46 = vpop.f32.mrf.mxu0 }
 0xbee   :  { %2807 = vtanh.f32 %v1553_v45 }
 0xbfb   :  { %v2808_v47 = vpop.eup %2807 }
 0xbfc   :  { %2731 = vmatmul.mubr.f32.vlgmr.msra.gmra.mxu1 %v2808_v47 }
 0xcbc   :  { %v1622_v59 = vpop.f32.mrf.mxu1 }
 0xcbd   :  { %v1626_v60 = vadd.f32 %v1622_v59, %v1031_v58 }
 0xcbe   :  { %v2732_v61 = vpop.f32.mrf.mxu1 }
 0xcbf   :  { %2809 = vtanh.f32 %v1626_v60 }
 0xccc   :  { %v2810_v62 = vpop.eup %2809 }
 0xccd   :  { %2766 = vmatmul.mubr.f32.vlgmr.msra.gmra.mxu0 %v2810_v62 }
 0xd8d   :  { %v1720_v2 = vpop.f32.mrf.mxu0 }
 0xd8e   :  { %v1721_v43 = vadd.f32 %v1747_v1, %v1720_v2 }
 0xd8f   :  { %v2767_v53 = vpop.f32.mrf.mxu0 }
 0xd90   :  { %v1724_v0 = vmax.f32 %v1721_v43, 0.0 }
 0xd92   :  { %1725 = vst [vmem:[#allocation15] sm:$0xff] %v1724_v0 }
 0xd93   :  { %2942 = shalt.err (!%p2939_p6)
}
 0xd94   :  { %1736 = dma.vmem_to_hbm [thread:$0]  %s1734_s19, 128, %s3777_s9, [#allocation6]  }
 0xd95   :  { %2959 = dma.done.wait [#allocation6], 128  }
 0xd96   :  { %2960 = vsyncadd [#allocation6], 4294967168 }
 0xd97   :  { %1740 = vsyncpa [#allocation5], 1 }
 0xd98   :  { %1741 = vsyncpa [#allocation8], 1 }
 0xd99   :  { %1742 = vsyncpa [#allocation11], 1 }
 0xd9a   :  { %1743 = vsyncpa [#allocation14], 1 }
 0xd9b   :  { %1744 = vsyncpa [#allocation6], 1 }

</bundles_post_ra>
